<compile_context>
chip_gen: v7x
topology: tpu7x:2x2x1
jax: 0.10.0
libtpu: 0.0.40
codegen_flags: <defaults>
</compile_context>

<pallas_src>
import functools

import jax
import jax.numpy as jnp
from jax import lax
from jax.experimental import pallas as pl
from jax.experimental.pallas import tpu as pltpu


def gru_head_kernel(x_ref, w_ref, b_ref, out_ref,
                    gxr_scr, gxz_scr, gxn_scr, h_scr,
                    *, B, T, D, H, O):
    f32 = jnp.float32

    # ---- Phase 0: unpack fused weight / bias slabs (one-time prologue) -----
    wih = w_ref[pl.ds(0, D), :]                       # (D, 3H)
    whh = w_ref[pl.ds(D, H), :]                       # (H, 3H)
    wo = w_ref[pl.ds(D + H, H), :][:, :O]             # (H, O)
    bias_gx = b_ref[pl.ds(0, 1), :]                   # (1, 3H) = b_ih + [b_hr, b_hz, 0]
    bhh_n = b_ref[pl.ds(1, 1), :][:, :H]              # (1, H)
    bo = b_ref[pl.ds(2, 1), :][:, :O]                 # (1, O)

    # ---- Phase 1: hoisted batched input projection --------------------------
    # x arrives lane-dense (B, T*D); regroup once to time-major rows
    # (row = t*B + b), one MXU matmul over all T*B rows, biases added once.
    # Per-gate slices go to lane-0-aligned VMEM scratches so every per-step
    # operand in the recurrence is already aligned and vreg pressure stays low.
    x_tm = pltpu.einshape("btd->tbd", x_ref[...].reshape(B, T, D)).reshape(T * B, D)
    gx = jnp.dot(x_tm, wih, preferred_element_type=f32) + bias_gx   # (T*B, 3H)
    gxr_scr[...] = gx[:, :H]
    gxz_scr[...] = gx[:, H:2 * H]
    gxn_scr[...] = gx[:, 2 * H:]

    # ---- Phase 2: serial GRU recurrence (T static => fully unrolled) --------
    # t = 0: h_prev == 0, so h @ W_hh is skipped entirely (gh == 0, only b_hn
    # contributes to the n gate).
    r = jax.nn.sigmoid(gxr_scr[pl.ds(0, B), :])
    z = jax.nn.sigmoid(gxz_scr[pl.ds(0, B), :])
    n = jnp.tanh(gxn_scr[pl.ds(0, B), :] + r * bhh_n)
    h = n - z * n                                     # (1 - z) * n with h_prev = 0
    h_scr[pl.ds(0, B), :] = h

    for t in range(1, T):
        gh = jnp.dot(h, whh, preferred_element_type=f32)            # (B, 3H)
        sl = pl.ds(t * B, B)
        r = jax.nn.sigmoid(gxr_scr[sl, :] + gh[:, :H])
        z = jax.nn.sigmoid(gxz_scr[sl, :] + gh[:, H:2 * H])
        n = jnp.tanh(gxn_scr[sl, :] + r * (gh[:, 2 * H:] + bhh_n))
        h = n + z * (h - n)                           # == (1 - z) * n + z * h
        h_scr[sl, :] = h                              # store co-issues with next matmul

    # ---- Phase 3: hoisted batched output projection + single dense store ----
    y = jnp.dot(h_scr[...], wo, preferred_element_type=f32) + bo    # (T*B, O)
    # Back to batch-major merged into a lane-dense (B, T*O) slab: the final
    # store is one unmasked full-lane write / one dense writeback DMA.
    out_ref[...] = pltpu.einshape("tbo->bto", y.reshape(T, B, O)).reshape(B, T * O)


def pack_params(params):
    """One-time packing: fuse weights into one slab and biases into another
    (7 -> 3 input DMAs) and fold b_hr / b_hz into the hoisted input bias.
    b_hn must stay per-step (it is multiplied by r inside the n gate)."""
    f32 = jnp.float32
    D = params["wih_t"].shape[0]
    H = params["whh_t"].shape[0]
    G = 3 * H
    O = params["wo_t"].shape[1]
    assert G >= O and G >= H

    wo_pad = jnp.zeros((H, G), f32).at[:, :O].set(params["wo_t"])
    w_all = jnp.concatenate([params["wih_t"], params["whh_t"], wo_pad], axis=0)  # (D+2H, 3H)

    bias_gx = params["bih"] + jnp.concatenate(
        [params["bhh"][:, :2 * H], jnp.zeros((1, H), f32)], axis=1)               # (1, 3H)
    bhh_n = jnp.zeros((1, G), f32).at[:, :H].set(params["bhh"][:, 2 * H:])
    bo = jnp.zeros((1, G), f32).at[:, :O].set(params["bo"])
    b_all = jnp.concatenate([bias_gx, bhh_n, bo], axis=0)                          # (3, 3H)

    return {"w_all": w_all, "b_all": b_all, "d_in": D, "hidden": H, "out_dim": O}


def decoder_forward(x_btd, packed):
    """Decoder.forward(x) = rnn_head(x). x_btd: [B, T, D_in] -> [B, T, O]."""
    B, T, D = x_btd.shape
    H, O = packed["hidden"], packed["out_dim"]
    assert D == packed["d_in"]

    x_dense = x_btd.reshape(B, T * D)        # lane-dense input slab (free metadata reshape)

    kernel = functools.partial(gru_head_kernel, B=B, T=T, D=D, H=H, O=O)
    y = pl.pallas_call(
        kernel,
        out_shape=jax.ShapeDtypeStruct((B, T * O), jnp.float32),
        # No grid: single invocation, everything (< 100 KiB) lives in VMEM.
        in_specs=[
            pl.BlockSpec(memory_space=pltpu.MemorySpace.VMEM),   # x      (B, T*D)
            pl.BlockSpec(memory_space=pltpu.MemorySpace.VMEM),   # W slab (D+2H, 3H)
            pl.BlockSpec(memory_space=pltpu.MemorySpace.VMEM),   # b slab (3, 3H)
        ],
        out_specs=pl.BlockSpec(memory_space=pltpu.MemorySpace.VMEM),
        scratch_shapes=[
            pltpu.VMEM((T * B, H), jnp.float32),   # gx_r (time-major, lane-0 aligned)
            pltpu.VMEM((T * B, H), jnp.float32),   # gx_z
            pltpu.VMEM((T * B, H), jnp.float32),   # gx_n
            pltpu.VMEM((T * B, H), jnp.float32),   # h history
        ],
    )(x_dense, packed["w_all"], packed["b_all"])
    return y.reshape(B, T, O)                # free metadata reshape back to (B, T, O)


def reference_forward(x_btd, params):
    """Pure-JAX GRU + Linear reference (PyTorch semantics) for validation."""
    H = params["whh_t"].shape[0]

    def step(h, x_t):
        gx = x_t @ params["wih_t"] + params["bih"]
        gh = h @ params["whh_t"] + params["bhh"]
        r = jax.nn.sigmoid(gx[:, :H] + gh[:, :H])
        z = jax.nn.sigmoid(gx[:, H:2 * H] + gh[:, H:2 * H])
        n = jnp.tanh(gx[:, 2 * H:] + r * gh[:, 2 * H:])
        h_new = (1.0 - z) * n + z * h
        y = h_new @ params["wo_t"] + params["bo"]
        return h_new, y

    x_tbd = jnp.transpose(x_btd, (1, 0, 2))
    h0 = jnp.zeros((x_btd.shape[0], H), jnp.float32)
    _, ys = lax.scan(step, h0, x_tbd)
    return jnp.transpose(ys, (1, 0, 2))


def make_params(key, d_in, hidden, out_dim):
    ks = jax.random.split(key, 6)
    s_ih = 1.0 / jnp.sqrt(d_in)
    s_hh = 1.0 / jnp.sqrt(hidden)
    return {
        # stored pre-transposed: (K, N) so the kernel does x @ W
        "wih_t": jax.random.uniform(ks[0], (d_in, 3 * hidden), jnp.float32, -s_ih, s_ih),
        "bih":   jax.random.uniform(ks[1], (1, 3 * hidden), jnp.float32, -s_ih, s_ih),
        "whh_t": jax.random.uniform(ks[2], (hidden, 3 * hidden), jnp.float32, -s_hh, s_hh),
        "bhh":   jax.random.uniform(ks[3], (1, 3 * hidden), jnp.float32, -s_hh, s_hh),
        "wo_t":  jax.random.uniform(ks[4], (hidden, out_dim), jnp.float32, -s_hh, s_hh),
        "bo":    jax.random.uniform(ks[5], (1, out_dim), jnp.float32, -s_hh, s_hh),
    }


if __name__ == "__main__":
    B, T, D_IN, HIDDEN, OUT = 8, 8, 32, 32, 16

    key = jax.random.PRNGKey(0)
    k_x, k_p = jax.random.split(key)
    x = jax.random.normal(k_x, (B, T, D_IN), jnp.float32)
    params = make_params(k_p, D_IN, HIDDEN, OUT)
    packed = pack_params(params)

    out = decoder_forward(x, packed)
    out = jax.block_until_ready(out)

    ref = reference_forward(x, params)
    assert out.shape == (B, T, OUT)
    assert jnp.allclose(out, ref, atol=1e-4, rtol=1e-4), "mismatch vs reference"

    print("KERNEL_OK")
</pallas_src>

<mosaic_0001>
module attributes {stable_mosaic.version = 11 : i64} {
  func.func @gru_head_kernel(%arg0: memref<8x256xf32, #tpu.memory_space<vmem>>, %arg1: memref<96x96xf32, #tpu.memory_space<vmem>>, %arg2: memref<3x96xf32, #tpu.memory_space<vmem>>, %arg3: memref<8x128xf32, #tpu.memory_space<vmem>>, %arg4: memref<64x32xf32, #tpu.memory_space<vmem>>, %arg5: memref<64x32xf32, #tpu.memory_space<vmem>>, %arg6: memref<64x32xf32, #tpu.memory_space<vmem>>, %arg7: memref<64x32xf32, #tpu.memory_space<vmem>>) attributes {dimension_semantics = [], scalar_prefetch = 0 : i64, scratch_operands = 4 : i64, tpu.core_type = #tpu.core_type<tc>} {
    %c0 = arith.constant 0 : index
    %c0_0 = arith.constant 0 : index
    %0 = vector.load %arg1[%c0, %c0_0] : memref<96x96xf32, #tpu.memory_space<vmem>>, vector<32x96xf32>
    %c32 = arith.constant 32 : index
    %c0_1 = arith.constant 0 : index
    %1 = vector.load %arg1[%c32, %c0_1] : memref<96x96xf32, #tpu.memory_space<vmem>>, vector<32x96xf32>
    %c64 = arith.constant 64 : index
    %c0_2 = arith.constant 0 : index
    %2 = vector.load %arg1[%c64, %c0_2] : memref<96x96xf32, #tpu.memory_space<vmem>>, vector<32x96xf32>
    %3 = vector.extract_strided_slice %2 {offsets = [0, 0], sizes = [32, 16], strides = [1, 1]} : vector<32x96xf32> to vector<32x16xf32>
    %c0_3 = arith.constant 0 : index
    %c0_4 = arith.constant 0 : index
    %4 = vector.load %arg2[%c0_3, %c0_4] : memref<3x96xf32, #tpu.memory_space<vmem>>, vector<1x96xf32>
    %c1 = arith.constant 1 : index
    %c0_5 = arith.constant 0 : index
    %5 = vector.load %arg2[%c1, %c0_5] : memref<3x96xf32, #tpu.memory_space<vmem>>, vector<1x96xf32>
    %6 = vector.extract_strided_slice %5 {offsets = [0, 0], sizes = [1, 32], strides = [1, 1]} : vector<1x96xf32> to vector<1x32xf32>
    %c2 = arith.constant 2 : index
    %c0_6 = arith.constant 0 : index
    %7 = vector.load %arg2[%c2, %c0_6] : memref<3x96xf32, #tpu.memory_space<vmem>>, vector<1x96xf32>
    %8 = vector.extract_strided_slice %7 {offsets = [0, 0], sizes = [1, 16], strides = [1, 1]} : vector<1x96xf32> to vector<1x16xf32>
    %c0_7 = arith.constant 0 : index
    %c0_8 = arith.constant 0 : index
    %9 = vector.load %arg0[%c0_7, %c0_8] : memref<8x256xf32, #tpu.memory_space<vmem>>, vector<8x256xf32>
    %10 = vector.shape_cast %9 : vector<8x256xf32> to vector<8x8x32xf32>
    %11 = tpu.transpose %10, [1, 0, 2] : vector<8x8x32xf32> -> vector<8x8x32xf32>
    %12 = vector.shape_cast %11 : vector<8x8x32xf32> to vector<64x32xf32>
    %cst = arith.constant dense<0.000000e+00> : vector<64x96xf32>
    %13 = tpu.matmul %12, %0, %cst {dimension_numbers = #tpu.dot_dimension_numbers<[1], [0], [0], [1], [0, 0, 1, 1], [], []>} : vector<64x32xf32>, vector<32x96xf32>, vector<64x96xf32> -> vector<64x96xf32>
    %14 = vector.broadcast %4 : vector<1x96xf32> to vector<64x96xf32>
    %15 = arith.addf %13, %14 : vector<64x96xf32>
    %16 = vector.extract_strided_slice %15 {offsets = [0, 0], sizes = [64, 32], strides = [1, 1]} : vector<64x96xf32> to vector<64x32xf32>
    %c0_9 = arith.constant 0 : index
    %c0_10 = arith.constant 0 : index
    %17 = vector.load %arg4[%c0_9, %c0_10] : memref<64x32xf32, #tpu.memory_space<vmem>>, vector<64x32xf32>
    tpu.vector_store %arg4[%c0_9, %c0_10], %16 {strides = array<i32>} : memref<64x32xf32, #tpu.memory_space<vmem>>, vector<64x32xf32>,
    %18 = vector.extract_strided_slice %15 {offsets = [0, 32], sizes = [64, 32], strides = [1, 1]} : vector<64x96xf32> to vector<64x32xf32>
    %c0_11 = arith.constant 0 : index
    %c0_12 = arith.constant 0 : index
    %19 = vector.load %arg5[%c0_11, %c0_12] : memref<64x32xf32, #tpu.memory_space<vmem>>, vector<64x32xf32>
    tpu.vector_store %arg5[%c0_11, %c0_12], %18 {strides = array<i32>} : memref<64x32xf32, #tpu.memory_space<vmem>>, vector<64x32xf32>,
    %20 = vector.extract_strided_slice %15 {offsets = [0, 64], sizes = [64, 32], strides = [1, 1]} : vector<64x96xf32> to vector<64x32xf32>
    %c0_13 = arith.constant 0 : index
    %c0_14 = arith.constant 0 : index
    %21 = vector.load %arg6[%c0_13, %c0_14] : memref<64x32xf32, #tpu.memory_space<vmem>>, vector<64x32xf32>
    tpu.vector_store %arg6[%c0_13, %c0_14], %20 {strides = array<i32>} : memref<64x32xf32, #tpu.memory_space<vmem>>, vector<64x32xf32>,
    %c0_15 = arith.constant 0 : index
    %c0_16 = arith.constant 0 : index
    %22 = vector.load %arg4[%c0_15, %c0_16] : memref<64x32xf32, #tpu.memory_space<vmem>>, vector<8x32xf32>
    %23 = arith.negf %22 : vector<8x32xf32>
    %24 = math.exp %23 : vector<8x32xf32>
    %cst_17 = arith.constant 1.000000e+00 : f32
    %25 = vector.broadcast %cst_17 : f32 to vector<8x32xf32>
    %26 = arith.addf %25, %24 : vector<8x32xf32>
    %27 = arith.divf %25, %26 : vector<8x32xf32>
    %c0_18 = arith.constant 0 : index
    %c0_19 = arith.constant 0 : index
    %28 = vector.load %arg5[%c0_18, %c0_19] : memref<64x32xf32, #tpu.memory_space<vmem>>, vector<8x32xf32>
    %29 = arith.negf %28 : vector<8x32xf32>
    %30 = math.exp %29 : vector<8x32xf32>
    %cst_20 = arith.constant 1.000000e+00 : f32
    %31 = vector.broadcast %cst_20 : f32 to vector<8x32xf32>
    %32 = arith.addf %31, %30 : vector<8x32xf32>
    %33 = arith.divf %31, %32 : vector<8x32xf32>
    %c0_21 = arith.constant 0 : index
    %c0_22 = arith.constant 0 : index
    %34 = vector.load %arg6[%c0_21, %c0_22] : memref<64x32xf32, #tpu.memory_space<vmem>>, vector<8x32xf32>
    %35 = vector.broadcast %6 : vector<1x32xf32> to vector<8x32xf32>
    %36 = arith.mulf %27, %35 : vector<8x32xf32>
    %37 = arith.addf %34, %36 : vector<8x32xf32>
    %38 = math.tanh %37 : vector<8x32xf32>
    %39 = arith.mulf %33, %38 : vector<8x32xf32>
    %40 = arith.subf %38, %39 : vector<8x32xf32>
    %c0_23 = arith.constant 0 : index
    %c0_24 = arith.constant 0 : index
    %41 = vector.load %arg7[%c0_23, %c0_24] : memref<64x32xf32, #tpu.memory_space<vmem>>, vector<8x32xf32>
    tpu.vector_store %arg7[%c0_23, %c0_24], %40 {strides = array<i32>} : memref<64x32xf32, #tpu.memory_space<vmem>>, vector<8x32xf32>,
    %cst_25 = arith.constant dense<0.000000e+00> : vector<8x96xf32>
    %42 = tpu.matmul %40, %1, %cst_25 {dimension_numbers = #tpu.dot_dimension_numbers<[1], [0], [0], [1], [0, 0, 1, 1], [], []>} : vector<8x32xf32>, vector<32x96xf32>, vector<8x96xf32> -> vector<8x96xf32>
    %c8 = arith.constant 8 : index
    %c0_26 = arith.constant 0 : index
    %43 = vector.load %arg4[%c8, %c0_26] : memref<64x32xf32, #tpu.memory_space<vmem>>, vector<8x32xf32>
    %44 = vector.extract_strided_slice %42 {offsets = [0, 0], sizes = [8, 32], strides = [1, 1]} : vector<8x96xf32> to vector<8x32xf32>
    %45 = arith.addf %43, %44 : vector<8x32xf32>
    %46 = arith.negf %45 : vector<8x32xf32>
    %47 = math.exp %46 : vector<8x32xf32>
    %cst_27 = arith.constant 1.000000e+00 : f32
    %48 = vector.broadcast %cst_27 : f32 to vector<8x32xf32>
    %49 = arith.addf %48, %47 : vector<8x32xf32>
    %50 = arith.divf %48, %49 : vector<8x32xf32>
    %c8_28 = arith.constant 8 : index
    %c0_29 = arith.constant 0 : index
    %51 = vector.load %arg5[%c8_28, %c0_29] : memref<64x32xf32, #tpu.memory_space<vmem>>, vector<8x32xf32>
    %52 = vector.extract_strided_slice %42 {offsets = [0, 32], sizes = [8, 32], strides = [1, 1]} : vector<8x96xf32> to vector<8x32xf32>
    %53 = arith.addf %51, %52 : vector<8x32xf32>
    %54 = arith.negf %53 : vector<8x32xf32>
    %55 = math.exp %54 : vector<8x32xf32>
    %cst_30 = arith.constant 1.000000e+00 : f32
    %56 = vector.broadcast %cst_30 : f32 to vector<8x32xf32>
    %57 = arith.addf %56, %55 : vector<8x32xf32>
    %58 = arith.divf %56, %57 : vector<8x32xf32>
    %c8_31 = arith.constant 8 : index
    %c0_32 = arith.constant 0 : index
    %59 = vector.load %arg6[%c8_31, %c0_32] : memref<64x32xf32, #tpu.memory_space<vmem>>, vector<8x32xf32>
    %60 = vector.extract_strided_slice %42 {offsets = [0, 64], sizes = [8, 32], strides = [1, 1]} : vector<8x96xf32> to vector<8x32xf32>
    %61 = vector.broadcast %6 : vector<1x32xf32> to vector<8x32xf32>
    %62 = arith.addf %60, %61 : vector<8x32xf32>
    %63 = arith.mulf %50, %62 : vector<8x32xf32>
    %64 = arith.addf %59, %63 : vector<8x32xf32>
    %65 = math.tanh %64 : vector<8x32xf32>
    %66 = arith.subf %40, %65 : vector<8x32xf32>
    %67 = arith.mulf %58, %66 : vector<8x32xf32>
    %68 = arith.addf %65, %67 : vector<8x32xf32>
    %c8_33 = arith.constant 8 : index
    %c0_34 = arith.constant 0 : index
    %69 = vector.load %arg7[%c8_33, %c0_34] : memref<64x32xf32, #tpu.memory_space<vmem>>, vector<8x32xf32>
    tpu.vector_store %arg7[%c8_33, %c0_34], %68 {strides = array<i32>} : memref<64x32xf32, #tpu.memory_space<vmem>>, vector<8x32xf32>,
    %cst_35 = arith.constant dense<0.000000e+00> : vector<8x96xf32>
    %70 = tpu.matmul %68, %1, %cst_35 {dimension_numbers = #tpu.dot_dimension_numbers<[1], [0], [0], [1], [0, 0, 1, 1], [], []>} : vector<8x32xf32>, vector<32x96xf32>, vector<8x96xf32> -> vector<8x96xf32>
    %c16 = arith.constant 16 : index
    %c0_36 = arith.constant 0 : index
    %71 = vector.load %arg4[%c16, %c0_36] : memref<64x32xf32, #tpu.memory_space<vmem>>, vector<8x32xf32>
    %72 = vector.extract_strided_slice %70 {offsets = [0, 0], sizes = [8, 32], strides = [1, 1]} : vector<8x96xf32> to vector<8x32xf32>
    %73 = arith.addf %71, %72 : vector<8x32xf32>
    %74 = arith.negf %73 : vector<8x32xf32>
    %75 = math.exp %74 : vector<8x32xf32>
    %cst_37 = arith.constant 1.000000e+00 : f32
    %76 = vector.broadcast %cst_37 : f32 to vector<8x32xf32>
    %77 = arith.addf %76, %75 : vector<8x32xf32>
    %78 = arith.divf %76, %77 : vector<8x32xf32>
    %c16_38 = arith.constant 16 : index
    %c0_39 = arith.constant 0 : index
    %79 = vector.load %arg5[%c16_38, %c0_39] : memref<64x32xf32, #tpu.memory_space<vmem>>, vector<8x32xf32>
    %80 = vector.extract_strided_slice %70 {offsets = [0, 32], sizes = [8, 32], strides = [1, 1]} : vector<8x96xf32> to vector<8x32xf32>
    %81 = arith.addf %79, %80 : vector<8x32xf32>
    %82 = arith.negf %81 : vector<8x32xf32>
    %83 = math.exp %82 : vector<8x32xf32>
    %cst_40 = arith.constant 1.000000e+00 : f32
    %84 = vector.broadcast %cst_40 : f32 to vector<8x32xf32>
    %85 = arith.addf %84, %83 : vector<8x32xf32>
    %86 = arith.divf %84, %85 : vector<8x32xf32>
    %c16_41 = arith.constant 16 : index
    %c0_42 = arith.constant 0 : index
    %87 = vector.load %arg6[%c16_41, %c0_42] : memref<64x32xf32, #tpu.memory_space<vmem>>, vector<8x32xf32>
    %88 = vector.extract_strided_slice %70 {offsets = [0, 64], sizes = [8, 32], strides = [1, 1]} : vector<8x96xf32> to vector<8x32xf32>
    %89 = vector.broadcast %6 : vector<1x32xf32> to vector<8x32xf32>
    %90 = arith.addf %88, %89 : vector<8x32xf32>
    %91 = arith.mulf %78, %90 : vector<8x32xf32>
    %92 = arith.addf %87, %91 : vector<8x32xf32>
    %93 = math.tanh %92 : vector<8x32xf32>
    %94 = arith.subf %68, %93 : vector<8x32xf32>
    %95 = arith.mulf %86, %94 : vector<8x32xf32>
    %96 = arith.addf %93, %95 : vector<8x32xf32>
    %c16_43 = arith.constant 16 : index
    %c0_44 = arith.constant 0 : index
    %97 = vector.load %arg7[%c16_43, %c0_44] : memref<64x32xf32, #tpu.memory_space<vmem>>, vector<8x32xf32>
    tpu.vector_store %arg7[%c16_43, %c0_44], %96 {strides = array<i32>} : memref<64x32xf32, #tpu.memory_space<vmem>>, vector<8x32xf32>,
    %cst_45 = arith.constant dense<0.000000e+00> : vector<8x96xf32>
    %98 = tpu.matmul %96, %1, %cst_45 {dimension_numbers = #tpu.dot_dimension_numbers<[1], [0], [0], [1], [0, 0, 1, 1], [], []>} : vector<8x32xf32>, vector<32x96xf32>, vector<8x96xf32> -> vector<8x96xf32>
    %c24 = arith.constant 24 : index
    %c0_46 = arith.constant 0 : index
    %99 = vector.load %arg4[%c24, %c0_46] : memref<64x32xf32, #tpu.memory_space<vmem>>, vector<8x32xf32>
    %100 = vector.extract_strided_slice %98 {offsets = [0, 0], sizes = [8, 32], strides = [1, 1]} : vector<8x96xf32> to vector<8x32xf32>
    %101 = arith.addf %99, %100 : vector<8x32xf32>
    %102 = arith.negf %101 : vector<8x32xf32>
    %103 = math.exp %102 : vector<8x32xf32>
    %cst_47 = arith.constant 1.000000e+00 : f32
    %104 = vector.broadcast %cst_47 : f32 to vector<8x32xf32>
    %105 = arith.addf %104, %103 : vector<8x32xf32>
    %106 = arith.divf %104, %105 : vector<8x32xf32>
    %c24_48 = arith.constant 24 : index
    %c0_49 = arith.constant 0 : index
    %107 = vector.load %arg5[%c24_48, %c0_49] : memref<64x32xf32, #tpu.memory_space<vmem>>, vector<8x32xf32>
    %108 = vector.extract_strided_slice %98 {offsets = [0, 32], sizes = [8, 32], strides = [1, 1]} : vector<8x96xf32> to vector<8x32xf32>
    %109 = arith.addf %107, %108 : vector<8x32xf32>
    %110 = arith.negf %109 : vector<8x32xf32>
    %111 = math.exp %110 : vector<8x32xf32>
    %cst_50 = arith.constant 1.000000e+00 : f32
    %112 = vector.broadcast %cst_50 : f32 to vector<8x32xf32>
    %113 = arith.addf %112, %111 : vector<8x32xf32>
    %114 = arith.divf %112, %113 : vector<8x32xf32>
    %c24_51 = arith.constant 24 : index
    %c0_52 = arith.constant 0 : index
    %115 = vector.load %arg6[%c24_51, %c0_52] : memref<64x32xf32, #tpu.memory_space<vmem>>, vector<8x32xf32>
    %116 = vector.extract_strided_slice %98 {offsets = [0, 64], sizes = [8, 32], strides = [1, 1]} : vector<8x96xf32> to vector<8x32xf32>
    %117 = vector.broadcast %6 : vector<1x32xf32> to vector<8x32xf32>
    %118 = arith.addf %116, %117 : vector<8x32xf32>
    %119 = arith.mulf %106, %118 : vector<8x32xf32>
    %120 = arith.addf %115, %119 : vector<8x32xf32>
    %121 = math.tanh %120 : vector<8x32xf32>
    %122 = arith.subf %96, %121 : vector<8x32xf32>
    %123 = arith.mulf %114, %122 : vector<8x32xf32>
    %124 = arith.addf %121, %123 : vector<8x32xf32>
    %c24_53 = arith.constant 24 : index
    %c0_54 = arith.constant 0 : index
    %125 = vector.load %arg7[%c24_53, %c0_54] : memref<64x32xf32, #tpu.memory_space<vmem>>, vector<8x32xf32>
    tpu.vector_store %arg7[%c24_53, %c0_54], %124 {strides = array<i32>} : memref<64x32xf32, #tpu.memory_space<vmem>>, vector<8x32xf32>,
    %cst_55 = arith.constant dense<0.000000e+00> : vector<8x96xf32>
    %126 = tpu.matmul %124, %1, %cst_55 {dimension_numbers = #tpu.dot_dimension_numbers<[1], [0], [0], [1], [0, 0, 1, 1], [], []>} : vector<8x32xf32>, vector<32x96xf32>, vector<8x96xf32> -> vector<8x96xf32>
    %c32_56 = arith.constant 32 : index
    %c0_57 = arith.constant 0 : index
    %127 = vector.load %arg4[%c32_56, %c0_57] : memref<64x32xf32, #tpu.memory_space<vmem>>, vector<8x32xf32>
    %128 = vector.extract_strided_slice %126 {offsets = [0, 0], sizes = [8, 32], strides = [1, 1]} : vector<8x96xf32> to vector<8x32xf32>
    %129 = arith.addf %127, %128 : vector<8x32xf32>
    %130 = arith.negf %129 : vector<8x32xf32>
    %131 = math.exp %130 : vector<8x32xf32>
    %cst_58 = arith.constant 1.000000e+00 : f32
    %132 = vector.broadcast %cst_58 : f32 to vector<8x32xf32>
    %133 = arith.addf %132, %131 : vector<8x32xf32>
    %134 = arith.divf %132, %133 : vector<8x32xf32>
    %c32_59 = arith.constant 32 : index
    %c0_60 = arith.constant 0 : index
    %135 = vector.load %arg5[%c32_59, %c0_60] : memref<64x32xf32, #tpu.memory_space<vmem>>, vector<8x32xf32>
    %136 = vector.extract_strided_slice %126 {offsets = [0, 32], sizes = [8, 32], strides = [1, 1]} : vector<8x96xf32> to vector<8x32xf32>
    %137 = arith.addf %135, %136 : vector<8x32xf32>
    %138 = arith.negf %137 : vector<8x32xf32>
    %139 = math.exp %138 : vector<8x32xf32>
    %cst_61 = arith.constant 1.000000e+00 : f32
    %140 = vector.broadcast %cst_61 : f32 to vector<8x32xf32>
    %141 = arith.addf %140, %139 : vector<8x32xf32>
    %142 = arith.divf %140, %141 : vector<8x32xf32>
    %c32_62 = arith.constant 32 : index
    %c0_63 = arith.constant 0 : index
    %143 = vector.load %arg6[%c32_62, %c0_63] : memref<64x32xf32, #tpu.memory_space<vmem>>, vector<8x32xf32>
    %144 = vector.extract_strided_slice %126 {offsets = [0, 64], sizes = [8, 32], strides = [1, 1]} : vector<8x96xf32> to vector<8x32xf32>
    %145 = vector.broadcast %6 : vector<1x32xf32> to vector<8x32xf32>
    %146 = arith.addf %144, %145 : vector<8x32xf32>
    %147 = arith.mulf %134, %146 : vector<8x32xf32>
    %148 = arith.addf %143, %147 : vector<8x32xf32>
    %149 = math.tanh %148 : vector<8x32xf32>
    %150 = arith.subf %124, %149 : vector<8x32xf32>
    %151 = arith.mulf %142, %150 : vector<8x32xf32>
    %152 = arith.addf %149, %151 : vector<8x32xf32>
    %c32_64 = arith.constant 32 : index
    %c0_65 = arith.constant 0 : index
    %153 = vector.load %arg7[%c32_64, %c0_65] : memref<64x32xf32, #tpu.memory_space<vmem>>, vector<8x32xf32>
    tpu.vector_store %arg7[%c32_64, %c0_65], %152 {strides = array<i32>} : memref<64x32xf32, #tpu.memory_space<vmem>>, vector<8x32xf32>,
    %cst_66 = arith.constant dense<0.000000e+00> : vector<8x96xf32>
    %154 = tpu.matmul %152, %1, %cst_66 {dimension_numbers = #tpu.dot_dimension_numbers<[1], [0], [0], [1], [0, 0, 1, 1], [], []>} : vector<8x32xf32>, vector<32x96xf32>, vector<8x96xf32> -> vector<8x96xf32>
    %c40 = arith.constant 40 : index
    %c0_67 = arith.constant 0 : index
    %155 = vector.load %arg4[%c40, %c0_67] : memref<64x32xf32, #tpu.memory_space<vmem>>, vector<8x32xf32>
    %156 = vector.extract_strided_slice %154 {offsets = [0, 0], sizes = [8, 32], strides = [1, 1]} : vector<8x96xf32> to vector<8x32xf32>
    %157 = arith.addf %155, %156 : vector<8x32xf32>
    %158 = arith.negf %157 : vector<8x32xf32>
    %159 = math.exp %158 : vector<8x32xf32>
    %cst_68 = arith.constant 1.000000e+00 : f32
    %160 = vector.broadcast %cst_68 : f32 to vector<8x32xf32>
    %161 = arith.addf %160, %159 : vector<8x32xf32>
    %162 = arith.divf %160, %161 : vector<8x32xf32>
    %c40_69 = arith.constant 40 : index
    %c0_70 = arith.constant 0 : index
    %163 = vector.load %arg5[%c40_69, %c0_70] : memref<64x32xf32, #tpu.memory_space<vmem>>, vector<8x32xf32>
    %164 = vector.extract_strided_slice %154 {offsets = [0, 32], sizes = [8, 32], strides = [1, 1]} : vector<8x96xf32> to vector<8x32xf32>
    %165 = arith.addf %163, %164 : vector<8x32xf32>
    %166 = arith.negf %165 : vector<8x32xf32>
    %167 = math.exp %166 : vector<8x32xf32>
    %cst_71 = arith.constant 1.000000e+00 : f32
    %168 = vector.broadcast %cst_71 : f32 to vector<8x32xf32>
    %169 = arith.addf %168, %167 : vector<8x32xf32>
    %170 = arith.divf %168, %169 : vector<8x32xf32>
    %c40_72 = arith.constant 40 : index
    %c0_73 = arith.constant 0 : index
    %171 = vector.load %arg6[%c40_72, %c0_73] : memref<64x32xf32, #tpu.memory_space<vmem>>, vector<8x32xf32>
    %172 = vector.extract_strided_slice %154 {offsets = [0, 64], sizes = [8, 32], strides = [1, 1]} : vector<8x96xf32> to vector<8x32xf32>
    %173 = vector.broadcast %6 : vector<1x32xf32> to vector<8x32xf32>
    %174 = arith.addf %172, %173 : vector<8x32xf32>
    %175 = arith.mulf %162, %174 : vector<8x32xf32>
    %176 = arith.addf %171, %175 : vector<8x32xf32>
    %177 = math.tanh %176 : vector<8x32xf32>
    %178 = arith.subf %152, %177 : vector<8x32xf32>
    %179 = arith.mulf %170, %178 : vector<8x32xf32>
    %180 = arith.addf %177, %179 : vector<8x32xf32>
    %c40_74 = arith.constant 40 : index
    %c0_75 = arith.constant 0 : index
    %181 = vector.load %arg7[%c40_74, %c0_75] : memref<64x32xf32, #tpu.memory_space<vmem>>, vector<8x32xf32>
    tpu.vector_store %arg7[%c40_74, %c0_75], %180 {strides = array<i32>} : memref<64x32xf32, #tpu.memory_space<vmem>>, vector<8x32xf32>,
    %cst_76 = arith.constant dense<0.000000e+00> : vector<8x96xf32>
    %182 = tpu.matmul %180, %1, %cst_76 {dimension_numbers = #tpu.dot_dimension_numbers<[1], [0], [0], [1], [0, 0, 1, 1], [], []>} : vector<8x32xf32>, vector<32x96xf32>, vector<8x96xf32> -> vector<8x96xf32>
    %c48 = arith.constant 48 : index
    %c0_77 = arith.constant 0 : index
    %183 = vector.load %arg4[%c48, %c0_77] : memref<64x32xf32, #tpu.memory_space<vmem>>, vector<8x32xf32>
    %184 = vector.extract_strided_slice %182 {offsets = [0, 0], sizes = [8, 32], strides = [1, 1]} : vector<8x96xf32> to vector<8x32xf32>
    %185 = arith.addf %183, %184 : vector<8x32xf32>
    %186 = arith.negf %185 : vector<8x32xf32>
    %187 = math.exp %186 : vector<8x32xf32>
    %cst_78 = arith.constant 1.000000e+00 : f32
    %188 = vector.broadcast %cst_78 : f32 to vector<8x32xf32>
    %189 = arith.addf %188, %187 : vector<8x32xf32>
    %190 = arith.divf %188, %189 : vector<8x32xf32>
    %c48_79 = arith.constant 48 : index
    %c0_80 = arith.constant 0 : index
    %191 = vector.load %arg5[%c48_79, %c0_80] : memref<64x32xf32, #tpu.memory_space<vmem>>, vector<8x32xf32>
    %192 = vector.extract_strided_slice %182 {offsets = [0, 32], sizes = [8, 32], strides = [1, 1]} : vector<8x96xf32> to vector<8x32xf32>
    %193 = arith.addf %191, %192 : vector<8x32xf32>
    %194 = arith.negf %193 : vector<8x32xf32>
    %195 = math.exp %194 : vector<8x32xf32>
    %cst_81 = arith.constant 1.000000e+00 : f32
    %196 = vector.broadcast %cst_81 : f32 to vector<8x32xf32>
    %197 = arith.addf %196, %195 : vector<8x32xf32>
    %198 = arith.divf %196, %197 : vector<8x32xf32>
    %c48_82 = arith.constant 48 : index
    %c0_83 = arith.constant 0 : index
    %199 = vector.load %arg6[%c48_82, %c0_83] : memref<64x32xf32, #tpu.memory_space<vmem>>, vector<8x32xf32>
    %200 = vector.extract_strided_slice %182 {offsets = [0, 64], sizes = [8, 32], strides = [1, 1]} : vector<8x96xf32> to vector<8x32xf32>
    %201 = vector.broadcast %6 : vector<1x32xf32> to vector<8x32xf32>
    %202 = arith.addf %200, %201 : vector<8x32xf32>
    %203 = arith.mulf %190, %202 : vector<8x32xf32>
    %204 = arith.addf %199, %203 : vector<8x32xf32>
    %205 = math.tanh %204 : vector<8x32xf32>
    %206 = arith.subf %180, %205 : vector<8x32xf32>
    %207 = arith.mulf %198, %206 : vector<8x32xf32>
    %208 = arith.addf %205, %207 : vector<8x32xf32>
    %c48_84 = arith.constant 48 : index
    %c0_85 = arith.constant 0 : index
    %209 = vector.load %arg7[%c48_84, %c0_85] : memref<64x32xf32, #tpu.memory_space<vmem>>, vector<8x32xf32>
    tpu.vector_store %arg7[%c48_84, %c0_85], %208 {strides = array<i32>} : memref<64x32xf32, #tpu.memory_space<vmem>>, vector<8x32xf32>,
    %cst_86 = arith.constant dense<0.000000e+00> : vector<8x96xf32>
    %210 = tpu.matmul %208, %1, %cst_86 {dimension_numbers = #tpu.dot_dimension_numbers<[1], [0], [0], [1], [0, 0, 1, 1], [], []>} : vector<8x32xf32>, vector<32x96xf32>, vector<8x96xf32> -> vector<8x96xf32>
    %c56 = arith.constant 56 : index
    %c0_87 = arith.constant 0 : index
    %211 = vector.load %arg4[%c56, %c0_87] : memref<64x32xf32, #tpu.memory_space<vmem>>, vector<8x32xf32>
    %212 = vector.extract_strided_slice %210 {offsets = [0, 0], sizes = [8, 32], strides = [1, 1]} : vector<8x96xf32> to vector<8x32xf32>
    %213 = arith.addf %211, %212 : vector<8x32xf32>
    %214 = arith.negf %213 : vector<8x32xf32>
    %215 = math.exp %214 : vector<8x32xf32>
    %cst_88 = arith.constant 1.000000e+00 : f32
    %216 = vector.broadcast %cst_88 : f32 to vector<8x32xf32>
    %217 = arith.addf %216, %215 : vector<8x32xf32>
    %218 = arith.divf %216, %217 : vector<8x32xf32>
    %c56_89 = arith.constant 56 : index
    %c0_90 = arith.constant 0 : index
    %219 = vector.load %arg5[%c56_89, %c0_90] : memref<64x32xf32, #tpu.memory_space<vmem>>, vector<8x32xf32>
    %220 = vector.extract_strided_slice %210 {offsets = [0, 32], sizes = [8, 32], strides = [1, 1]} : vector<8x96xf32> to vector<8x32xf32>
    %221 = arith.addf %219, %220 : vector<8x32xf32>
    %222 = arith.negf %221 : vector<8x32xf32>
    %223 = math.exp %222 : vector<8x32xf32>
    %cst_91 = arith.constant 1.000000e+00 : f32
    %224 = vector.broadcast %cst_91 : f32 to vector<8x32xf32>
    %225 = arith.addf %224, %223 : vector<8x32xf32>
    %226 = arith.divf %224, %225 : vector<8x32xf32>
    %c56_92 = arith.constant 56 : index
    %c0_93 = arith.constant 0 : index
    %227 = vector.load %arg6[%c56_92, %c0_93] : memref<64x32xf32, #tpu.memory_space<vmem>>, vector<8x32xf32>
    %228 = vector.extract_strided_slice %210 {offsets = [0, 64], sizes = [8, 32], strides = [1, 1]} : vector<8x96xf32> to vector<8x32xf32>
    %229 = vector.broadcast %6 : vector<1x32xf32> to vector<8x32xf32>
    %230 = arith.addf %228, %229 : vector<8x32xf32>
    %231 = arith.mulf %218, %230 : vector<8x32xf32>
    %232 = arith.addf %227, %231 : vector<8x32xf32>
    %233 = math.tanh %232 : vector<8x32xf32>
    %234 = arith.subf %208, %233 : vector<8x32xf32>
    %235 = arith.mulf %226, %234 : vector<8x32xf32>
    %236 = arith.addf %233, %235 : vector<8x32xf32>
    %c56_94 = arith.constant 56 : index
    %c0_95 = arith.constant 0 : index
    %237 = vector.load %arg7[%c56_94, %c0_95] : memref<64x32xf32, #tpu.memory_space<vmem>>, vector<8x32xf32>
    tpu.vector_store %arg7[%c56_94, %c0_95], %236 {strides = array<i32>} : memref<64x32xf32, #tpu.memory_space<vmem>>, vector<8x32xf32>,
    %c0_96 = arith.constant 0 : index
    %c0_97 = arith.constant 0 : index
    %238 = vector.load %arg7[%c0_96, %c0_97] : memref<64x32xf32, #tpu.memory_space<vmem>>, vector<64x32xf32>
    %cst_98 = arith.constant dense<0.000000e+00> : vector<64x16xf32>
    %239 = tpu.matmul %238, %3, %cst_98 {dimension_numbers = #tpu.dot_dimension_numbers<[1], [0], [0], [1], [0, 0, 1, 1], [], []>} : vector<64x32xf32>, vector<32x16xf32>, vector<64x16xf32> -> vector<64x16xf32>
    %240 = vector.broadcast %8 : vector<1x16xf32> to vector<64x16xf32>
    %241 = arith.addf %239, %240 : vector<64x16xf32>
    %242 = vector.shape_cast %241 : vector<64x16xf32> to vector<8x8x16xf32>
    %243 = tpu.transpose %242, [1, 0, 2] : vector<8x8x16xf32> -> vector<8x8x16xf32>
    %244 = vector.shape_cast %243 : vector<8x8x16xf32> to vector<8x128xf32>
    %c0_99 = arith.constant 0 : index
    %c0_100 = arith.constant 0 : index
    %245 = vector.load %arg3[%c0_99, %c0_100] : memref<8x128xf32, #tpu.memory_space<vmem>>, vector<8x128xf32>
    tpu.vector_store %arg3[%c0_99, %c0_100], %244 {strides = array<i32>} : memref<8x128xf32, #tpu.memory_space<vmem>>, vector<8x128xf32>,
    return
  }
}

</mosaic_0001>

<bundles_post_ra>
// kernel: tpu_custom_call.1
= control target key start
LH: loop header
LB: loop body
LE: loop exit
PB: predicated region body
PF: predicated region fallthrough
CT: control target
= control target key end

     0   :  { %8 = vsyncpa [#allocation7], 0  ;;  %s2633_s0 = inlined_call_operand.hbm [shape: f32[8,256], index: 0, kind: input, shape index: {}]   ;;  %s2634_s1 = inlined_call_operand.hbm [shape: f32[96,96], index: 1, kind: input, shape index: {}]   ;;  %s2635_s2 = inlined_call_operand.vmem [shape: f32[3,96], index: 2, kind: input, shape index: {}]   ;;  %s2636_s3 = inlined_call_operand.hbm [shape: f32[8,128], index: 3, kind: output, shape index: {}]  }
   0x1   :  { %9 = vsyncpa [#allocation10], 0 }
   0x2   :  { %10 = vsyncpa [#allocation8], 0  ;;  %s2267_s12 = smov [#allocation6]   ;;  %s2268_s14 = smov [#allocation9]  }
   0x3   :  { %s17_s13 = sshll.u32 %s2267_s12, 4  ;;  %s26_s15 = sshll.u32 %s2268_s14, 4  ;;  %s18_s13 = int_to_ptr.vmem [resolvable:$true] %s17_s13  ;;  %s2304_s15 = int_to_ptr.vmem [resolvable:$true] %s26_s15 }
   0x4   :  { %s2195_s18 = scalar_lea.hbm %s2633_s0, 256 }
   0x5   :  { %p2196_p0 = scmp.ne.s32.totalorder %s2633_s0, %s2195_s18  ;;  %p2199_p1 = scmp.lt.u32.totalorder %s2195_s18, %s2633_s0 }
   0x7   :  { %p2201_p2 = pnand %p2199_p1, %p2196_p0 }
   0x9   :  { %2204 = shalt.err (!%p2201_p2)
}
   0xa   :  { %s2205_s23 = scalar_lea.vmem %s18_s13, 256  ;;  %p2210_p4 = scmp.lt.s32.totalorder %s18_s13, %s18_s13 }
   0xb   :  { %p2206_p3 = scmp.ne.s32.totalorder %s18_s13, %s2205_s23  ;;  %p2211_p5 = scmp.lt.s32.totalorder %s2205_s23, %s2205_s23 }
   0xd   :  { %p2212_p6 = por %p2211_p5, %p2210_p4 }
   0xf   :  { %p2213_p7 = pnand %p2212_p6, %p2206_p3 }
  0x11   :  { %2216 = shalt.err (!%p2213_p7)
}
  0x12   :  { %20 = dma.hbm_to_vmem [thread:$0]  %s2633_s0, 256, %s18_s13, [#allocation7]  }
  0x13   :  { %s2217_s28 = scalar_lea.hbm %s2634_s1, 1536 }
  0x14   :  { %p2218_p8 = scmp.ne.s32.totalorder %s2634_s1, %s2217_s28  ;;  %p2221_p9 = scmp.lt.u32.totalorder %s2217_s28, %s2634_s1 }
  0x16   :  { %p2223_p10 = pnand %p2221_p9, %p2218_p8 }
  0x18   :  { %2226 = shalt.err (!%p2223_p10)
}
  0x19   :  { %s2227_s6 = scalar_lea.vmem %s2304_s15, 1536  ;;  %p2232_p12 = scmp.lt.s32.totalorder %s2304_s15, %s2304_s15 }
  0x1a   :  { %p2228_p11 = scmp.ne.s32.totalorder %s2304_s15, %s2227_s6  ;;  %p2233_p13 = scmp.lt.s32.totalorder %s2227_s6, %s2227_s6 }
  0x1c   :  { %p2234_p0 = por %p2233_p13, %p2232_p12 }
  0x1e   :  { %p2235_p1 = pnand %p2234_p0, %p2228_p11 }
  0x20   :  { %2238 = shalt.err (!%p2235_p1)
}
  0x21   :  { %s2269_s0 = smov 128   ;;  %s2270_s7 = smov 8  }
  0x22   :  { %32 = dma.hbm_to_vmem [thread:$0]  %s2634_s1, 1536, %s2304_s15, [#allocation10], %s2269_s0, %s2269_s0, %s2270_s7  }
  0x23   :  { %2261 = dma.done.wait [#allocation7], 256  }
  0x24   :  { %2262 = vsyncadd [#allocation7], 4294967040 }
  0x25   :  { %2263 = dma.done.wait [#allocation10], 1536  }
  0x26   :  { %2264 = vsyncadd [#allocation10], 4294965760  ;;  %v56_v0 = vld [vmem:[#allocation6] sm:$0xff]  ;;  %v41_v1 = vld [vmem:[#allocation9] sm:$0xff]  ;;  %s2271_s10 = smov 32   ;;  %s2272_s11 = smov 96   ;;  %v83_v9 = vlaneseq }
  0x27   :  { %v42_v2 = vld [vmem:[#allocation9 + $0x8] sm:$0xff]  ;;  %65 = vrot.lane.b32.xlu1 %v56_v0, %s2271_s10  ;;  %59 = vrot.lane.b32.xlu0 %v56_v0, %s2272_s11  ;;  %v43_v4 = vld [vmem:[#allocation9 + $0x10] sm:$0xff]  ;;  %v44_v5 = vld [vmem:[#allocation9 + $0x18] sm:$0xff]  ;;  %s2273_s1 = smov 64   ;;  %v2274_v7 = vmov 1983009808  }
  0x28   :  { %v2040_v3 = vpack.c.bf16 %v42_v2, %v41_v1  ;;  %v2044_v6 = vpack.c.bf16 %v44_v5, %v43_v4  ;;  %v81_v8 = vunpack.c.l.s4 %v2274_v7  ;;  %v2275_v10 = vmov 1934713408   ;;  %v2362_v56 = vld [vmem:[#allocation6 + $0x8] sm:$0xff]  ;;  %v2371_v57 = vld [vmem:[%s2635_s2 + $0x1] ss:$0 sm:$0xff]  ;;  %v45_v4 = vld [vmem:[#allocation9 + $0x20] sm:$0xff] }
  0x29   :  { %v145_v11 = vunpack.c.l.s4 %v2275_v10  ;;  %v84_v13 = vshrl.u32 %v83_v9, 7  ;;  %vm354_vm0 = vcmask 261120   ;;  %v2378_v58 = vld [vmem:[%s2635_s2] ss:$0 sm:$0xff]  ;;  %v46_v5 = vld [vmem:[#allocation9 + $0x28] sm:$0xff]  ;;  %vm2277_vm1 = vmmov 0  }
  0x2a   :  { %2041 = vmatprep.subr.bf16.mxu0 %v2040_v3  ;;  %v82_v12 = vunpack.c.0.s8 %v81_v8  ;;  %v47_v7 = vld [vmem:[#allocation9 + $0x30] sm:$0xff]  ;;  %v48_v8 = vld [vmem:[#allocation9 + $0x38] sm:$0xff]  ;;  %v2278_v10 = vmov 0.0   ;;  %s2280_s18 = smov 48   ;;  %s2281_s19 = smov 80   ;;  %vm1776_vm2 = vcmask 130048  }
  0x2b   :  { %2043 = vmatpush3.bf16.msra.mxu0 %v2040_v3  ;;  %62 = vrot.lane.b32.xlu0 %v56_v0, %s2273_s1  ;;  %v146_v16 = vunpack.c.0.s8 %v145_v11  ;;  %v2276_v3 = vmov 0.0|0.0   ;;  %v2402_v9 = vpack.c.bf16 %v48_v8, %v47_v7  ;;  %s2282_s20 = smov 112   ;;  %vm1779_vm3 = vcmask 392192   ;;  %s2283_s21 = smov [#allocation11]  }
  0x2c   :  { %2045 = vmatprep.subr.bf16.mxu0 %v2044_v6  ;;  %v2338_v17 = vsub.s32 %v82_v12, %v84_v13  ;;  %2054 = vmatprep.subr.bf16.mxu1 %v2276_v3  ;;  %vm1781_vm4 = vcmask 523264   ;;  %vm1783_vm5 = vcmask 654336   ;;  %vm1785_vm6 = vcmask 785408   ;;  %s1796_s22 = sshll.u32 %s2283_s21, 4  ;;  %s1797_s22 = int_to_ptr.vmem [resolvable:$true] %s1796_s22 }
  0x2d   :  { %v2340_v23 = vsub.s32 %v146_v16, %v84_v13  ;;  %1962 = vmatprep.mubr.msk.f32.mxu1 %vm2277_vm1, %v2278_v10  ;;  %vm1787_vm7 = vcmask 916480   ;;  %s2239_s23 = scalar_lea.vmem %s1797_s22, 128  ;;  %p2244_p3 = scmp.lt.s32.totalorder %s1797_s22, %s1797_s22 }
  0x2e   :  { %p2240_p2 = scmp.ne.s32.totalorder %s1797_s22, %s2239_s23  ;;  %p2245_p4 = scmp.lt.s32.totalorder %s2239_s23, %s2239_s23 }
  0x2f   :  { %2047 = vmatpush3.bf16.msra.mxu0 %v2044_v6  ;;  %69 = vrot.lane.b32.xlu0 %v2362_v56, %s2272_s11  ;;  %v2394_v6 = vpack.c.bf16 %v46_v5, %v45_v4 }
  0x30   :  { %2048 = vmatprep.subr.bf16.mxu0 %v2276_v3  ;;  %p2246_p5 = por %p2245_p4, %p2244_p3 }
  0x31   :  { %2056 = vmatpush3.bf16.msra.mxu1 %v2394_v6 }
  0x32   :  { %2057 = vmatprep.subr.bf16.mxu1 %v2276_v3  ;;  %p2247_p6 = pnand %p2246_p5, %p2240_p2 }
  0x33   :  { %75 = vrot.lane.b32.xlu0 %v2362_v56, %s2271_s10 }
  0x35   :  { %2059 = vmatpush3.bf16.msra.mxu1 %v2402_v9 }
  0x36   :  { %2066 = vmatprep.subr.bf16.mxu1 %v2276_v3 }
  0x37   :  { %684 = vrot.lane.b32.xlu0 %v2371_v57, %s2273_s1 }
  0x99   :  { %v66_v14 = vpop.permute.xlu1 %65  ;;  %v60_v15 = vpop.permute.xlu0 %59 }
  0x9a   :  { %v94_v18 = vcombine.low %v60_v15, %v66_v14  ;;  %v95_v19 = vcombine.high %v60_v15, %v66_v14 }
  0x9c   :  { %v102_v24 = vrot.slane %v94_v18, %v2338_v17  ;;  %v109_v25 = vrot.slane %v95_v19, %v2338_v17 }
  0x9d   :  { %v63_v20 = vpop.permute.xlu0 %62 }
  0x9e   :  { %v78_v21 = vcombine.low %v56_v0, %v63_v20  ;;  %v79_v22 = vcombine.high %v56_v0, %v63_v20 }
  0xa0   :  { %v86_v26 = vrot.slane %v78_v21, %v2338_v17  ;;  %v93_v27 = vrot.slane %v79_v22, %v2338_v17 }
  0xa1   :  { %v70_v13 = vpop.permute.xlu0 %69 }
  0xa2   :  { %v142_v28 = vcombine.low %v86_v26, %v102_v24  ;;  %v143_v29 = vcombine.high %v86_v26, %v102_v24  ;;  %v158_v30 = vcombine.low %v93_v27, %v109_v25  ;;  %v159_v31 = vcombine.high %v93_v27, %v109_v25 }
  0xa4   :  { %v150_v32 = vrot.slane %v142_v28, %v2340_v23  ;;  %v157_v33 = vrot.slane %v143_v29, %v2340_v23  ;;  %v166_v34 = vrot.slane %v158_v30, %v2340_v23  ;;  %v173_v35 = vrot.slane %v159_v31, %v2340_v23 }
  0xa5   :  { %v76_v14 = vpop.permute.xlu0 %75 }
  0xa6   :  { %v1806_v36 = vcombine.low %v150_v32, %v157_v33  ;;  %v1808_v37 = vcombine.high %v150_v32, %v157_v33  ;;  %v1810_v38 = vcombine.low %v166_v34, %v173_v35  ;;  %v1812_v39 = vcombine.high %v166_v34, %v173_v35 }
  0xa7   :  { %v126_v18 = vcombine.low %v70_v13, %v76_v14  ;;  %v127_v20 = vcombine.high %v70_v13, %v76_v14 }
  0xa8   :  { %v222_v40 = vrot.slane %v1806_v36, %v2338_v17  ;;  %v238_v41 = vrot.slane %v1808_v37, %v2338_v17  ;;  %v254_v42 = vrot.slane %v1810_v38, %v2338_v17  ;;  %v270_v43 = vrot.slane %v1812_v39, %v2338_v17 }
  0xa9   :  { %v134_v21 = vrot.slane %v126_v18, %v2338_v17  ;;  %v141_v24 = vrot.slane %v127_v20, %v2338_v17 }
  0xaa   :  { %v278_v44 = vcombine.low %v222_v40, %v238_v41  ;;  %v279_v45 = vcombine.high %v222_v40, %v238_v41  ;;  %v310_v46 = vcombine.low %v254_v42, %v270_v43  ;;  %v311_v47 = vcombine.high %v254_v42, %v270_v43 }
  0xac   :  { %v286_v48 = vrot.slane %v278_v44, %v2340_v23  ;;  %v318_v49 = vrot.slane %v310_v46, %v2340_v23  ;;  %v293_v50 = vrot.slane %v279_v45, %v2340_v23  ;;  %v325_v51 = vrot.slane %v311_v47, %v2340_v23 }
  0xae   :  { %v342_v52 = vcombine.low %v286_v48, %v318_v49  ;;  %v343_v53 = vcombine.high %v286_v48, %v318_v49  ;;  %v344_v54 = vcombine.low %v293_v50, %v325_v51  ;;  %v345_v55 = vcombine.high %v293_v50, %v325_v51 }
  0xb0   :  { %1931 = vmatprep.mubr.msk.f32.mxu0 %vm354_vm0, %v342_v52 }
  0xb1   :  { %1932 = vmatmul.mubr.msk.f32.vlgmr.msra.gmra.mrb[0].mxu0 %vm354_vm0, %v343_v53 }
  0xb2   :  { %1934 = vmatprep.mubr.msk.f32.mxu0 %vm354_vm0, %v344_v54  ;;  %2050 = vmatpush3.bf16.msra.mxu0 %v2394_v6 }
  0xb3   :  { %2051 = vmatprep.subr.bf16.mxu0 %v2276_v3 }
  0xb5   :  { %1935 = vmatmul.mubr.msk.f32.gmra.mrb[2].mxu0 %vm354_vm0, %v345_v55 }
  0xb6   :  { %2053 = vmatpush3.bf16.msra.mxu0 %v2402_v9 }
  0xb7   :  { %2060 = vmatprep.subr.bf16.mxu0 %v2276_v3 }
 0x184   :  { %v1933_v59 = vpop.f32.mrb[0].mxu0 }
 0x185   :  { %v451_v60 = vadd.f32 %v1933_v59, %v2378_v58  ;;  %v445_v61 = vpop.f32.mrb[1].mxu0 }
 0x186   :  { %v446_v62 = vadd.f32 %v2378_v58, %v445_v61 }
 0x187   :  { %485 = vst.msk [vmem:[#allocation2 + $0x8] sm:$0xff] %vm354_vm0, %v451_v60 }
 0x188   :  { %484 = vst.msk [vmem:[#allocation2] sm:$0xff] %vm354_vm0, %v446_v62  ;;  %v1936_v63 = vpop.f32.mrb[2].mxu0  ;;  %500 = vrot.lane.b32.xlu1 %v446_v62, %s2272_s11 }
 0x189   :  { %v461_v0 = vadd.f32 %v1936_v63, %v2378_v58  ;;  %v455_v1 = vpop.f32.mrb[3].mxu0 }
 0x18a   :  { %v456_v2 = vadd.f32 %v2378_v58, %v455_v1 }
 0x18b   :  { %487 = vst.msk [vmem:[#allocation2 + $0x18] sm:$0xff] %vm354_vm0, %v461_v0 }
 0x18c   :  { %486 = vst.msk [vmem:[#allocation2 + $0x10] sm:$0xff] %vm354_vm0, %v456_v2  ;;  %72 = vrot.lane.b32.xlu1 %v2362_v56, %s2273_s1 }
 0x18f   :  { %v564_v11 = vld [vmem:[#allocation2] sm:$0xff] }
 0x190   :  { %532 = vrot.lane.b32.xlu1 %v446_v62, %s2273_s1  ;;  %v1823_v12 = vmul.f32 -1.442695, %v564_v11 }
 0x192   :  { %2115 = vpow2.f32 %v1823_v12 }
 0x194   :  { %502 = vrot.lane.b32.xlu1 %v451_v60, %s2272_s11 }
 0x198   :  { %534 = vrot.lane.b32.xlu1 %v451_v60, %s2273_s1 }
 0x19c   :  { %504 = vrot.lane.b32.xlu1 %v456_v2, %s2272_s11  ;;  %v2116_v15 = vpop.eup %2115 }
 0x19d   :  { %v568_v19 = vadd.f32 1.0, %v2116_v15 }
 0x19f   :  { %2117 = vrcp.f32 %v568_v19 }
 0x1a0   :  { %536 = vrot.lane.b32.xlu1 %v456_v2, %s2273_s1 }
 0x1a4   :  { %506 = vrot.lane.b32.xlu1 %v461_v0, %s2272_s11 }
 0x1a8   :  { %538 = vrot.lane.b32.xlu1 %v461_v0, %s2273_s1 }
 0x1a9   :  { %v2118_v45 = vpop.eup %2117 }
 0x1fa   :  { %v501_v16 = vpop.permute.xlu1 %500 }
 0x1fb   :  { %524 = vst.msk [vmem:[#allocation3] sm:$0xff] %vm354_vm0, %v501_v16 }
 0x1fe   :  { %v73_v22 = vpop.permute.xlu1 %72 }
 0x1ff   :  { %v110_v25 = vcombine.low %v2362_v56, %v73_v22  ;;  %v111_v26 = vcombine.high %v2362_v56, %v73_v22  ;;  %v583_v56 = vmul.f32 %v2118_v45, %v2371_v57 }
 0x201   :  { %v118_v27 = vrot.slane %v110_v25, %v2338_v17  ;;  %v125_v28 = vrot.slane %v111_v26, %v2338_v17 }
 0x202   :  { %v571_v29 = vld [vmem:[#allocation3] sm:$0xff]  ;;  %v533_v30 = vpop.permute.xlu1 %532 }
 0x203   :  { %v1824_v31 = vmul.f32 -1.442695, %v571_v29  ;;  %v174_v32 = vcombine.low %v118_v27, %v134_v21  ;;  %v175_v33 = vcombine.high %v118_v27, %v134_v21  ;;  %v190_v34 = vcombine.low %v125_v28, %v141_v24  ;;  %556 = vst.msk [vmem:[#allocation4] sm:$0xff] %vm354_vm0, %v533_v30  ;;  %v2470_v27 = vpop.permute.xlu0 %684 }
 0x204   :  { %v191_v35 = vcombine.high %v125_v28, %v141_v24 }
 0x205   :  { %v182_v36 = vrot.slane %v174_v32, %v2340_v23  ;;  %v189_v37 = vrot.slane %v175_v33, %v2340_v23  ;;  %v198_v38 = vrot.slane %v190_v34, %v2340_v23  ;;  %2119 = vpow2.f32 %v1824_v31 }
 0x206   :  { %v205_v39 = vrot.slane %v191_v35, %v2340_v23  ;;  %v503_v40 = vpop.permute.xlu1 %502 }
 0x207   :  { %v1807_v41 = vcombine.low %v182_v36, %v189_v37  ;;  %v1809_v42 = vcombine.high %v182_v36, %v189_v37  ;;  %525 = vst.msk [vmem:[#allocation3 + $0x8] sm:$0xff] %vm354_vm0, %v503_v40 }
 0x208   :  { %v1811_v43 = vcombine.low %v198_v38, %v205_v39  ;;  %v1813_v44 = vcombine.high %v198_v38, %v205_v39 }
 0x209   :  { %v229_v46 = vrot.slane %v1807_v41, %v2338_v17  ;;  %v245_v47 = vrot.slane %v1809_v42, %v2338_v17 }
 0x20a   :  { %v261_v48 = vrot.slane %v1811_v43, %v2338_v17  ;;  %v277_v49 = vrot.slane %v1813_v44, %v2338_v17  ;;  %v535_v50 = vpop.permute.xlu1 %534  ;;  %v578_v53 = vld [vmem:[#allocation4] sm:$0xff] }
 0x20b   :  { %557 = vst.msk [vmem:[#allocation4 + $0x8] sm:$0xff] %vm354_vm0, %v535_v50  ;;  %v294_v51 = vcombine.low %v229_v46, %v245_v47  ;;  %v295_v52 = vcombine.high %v229_v46, %v245_v47  ;;  %v584_v0 = vadd.f32 %v583_v56, %v578_v53 }
 0x20c   :  { %v326_v54 = vcombine.low %v261_v48, %v277_v49  ;;  %v327_v55 = vcombine.high %v261_v48, %v277_v49 }
 0x20d   :  { %v302_v59 = vrot.slane %v294_v51, %v2340_v23  ;;  %v309_v60 = vrot.slane %v295_v52, %v2340_v23  ;;  %2121 = vtanh.f32 %v584_v0  ;;  %v772_v0 = vld [vmem:[#allocation2 + $0x10] sm:$0xff] }
 0x20e   :  { %v505_v61 = vpop.permute.xlu1 %504  ;;  %v334_v62 = vrot.slane %v326_v54, %v2340_v23  ;;  %v341_v63 = vrot.slane %v327_v55, %v2340_v23  ;;  %v670_v39 = vld [vmem:[#allocation3 + $0x8] sm:$0xff] }
 0x20f   :  { %v2120_v1 = vpop.eup %2119  ;;  %526 = vst.msk [vmem:[#allocation3 + $0x10] sm:$0xff] %vm354_vm0, %v505_v61 }
 0x210   :  { %v346_v2 = vcombine.low %v302_v59, %v334_v62  ;;  %v347_v4 = vcombine.high %v302_v59, %v334_v62  ;;  %v348_v5 = vcombine.low %v309_v60, %v341_v63  ;;  %v575_v7 = vadd.f32 1.0, %v2120_v1 }
 0x211   :  { %v349_v8 = vcombine.high %v309_v60, %v341_v63 }
 0x212   :  { %1937 = vmatprep.mubr.msk.f32.mxu0 %vm354_vm0, %v346_v2  ;;  %v537_v57 = vpop.permute.xlu1 %536  ;;  %2123 = vrcp.f32 %v575_v7  ;;  %v682_v48 = vld [vmem:[#allocation4 + $0x8] sm:$0xff] }
 0x213   :  { %1938 = vmatmul.mubr.msk.f32.gmra.mrb[4].mxu0 %vm354_vm0, %v347_v4  ;;  %558 = vst.msk [vmem:[#allocation4 + $0x10] sm:$0xff] %vm354_vm0, %v537_v57 }
 0x214   :  { %1940 = vmatprep.mubr.msk.f32.mxu0 %vm354_vm0, %v348_v5 }
 0x216   :  { %v507_v11 = vpop.permute.xlu1 %506  ;;  %v780_v7 = vld [vmem:[#allocation3 + $0x10] sm:$0xff] }
 0x217   :  { %1941 = vmatmul.mubr.msk.f32.gmra.mrb[6].mxu0 %vm354_vm0, %v349_v8  ;;  %527 = vst.msk [vmem:[#allocation3 + $0x18] sm:$0xff] %vm354_vm0, %v507_v11  ;;  %v2122_v13 = vpop.eup %2121 }
 0x218   :  { %1951 = vmatprep.mubr.msk.f32.mxu0 %vm2277_vm1, %v2278_v10 }
 0x21a   :  { %v539_v12 = vpop.permute.xlu1 %538 }
 0x21b   :  { %559 = vst.msk [vmem:[#allocation4 + $0x18] sm:$0xff] %vm354_vm0, %v539_v12 }
 0x21c   :  { %v2124_v14 = vpop.eup %2123 }
 0x21d   :  { %v586_v15 = vmul.f32 %v2124_v14, %v2122_v13 }
 0x21f   :  { %v2447_v16 = vsub.f32 %v2122_v13, %v586_v15  ;;  %v792_v15 = vld [vmem:[#allocation4 + $0x10] sm:$0xff] }
 0x221   :  { %588 = vst.msk [vmem:[#allocation5] sm:$0xff] %vm354_vm0, %v2447_v16  ;;  %1952 = vmatmul.mubr.msk.f32.vlgmr.msra.gmra.mrb[8].mxu0 %vm354_vm0, %v2447_v16 }
 0x222   :  { %2062 = vmatpush3.bf16.msra.mxu0 %v2394_v6  ;;  %1973 = vmatprep.mubr.msk.f32.mxu0 %vm2277_vm1, %v2278_v10 }
 0x223   :  { %2063 = vmatprep.subr.bf16.mxu0 %v2276_v3 }
 0x226   :  { %2065 = vmatpush3.bf16.msra.mxu0 %v2402_v9 }
 0x227   :  { %2072 = vmatprep.subr.bf16.mxu0 %v2276_v3 }
 0x2e6   :  { %v1939_v18 = vpop.f32.mrb[4].mxu0 }
 0x2e7   :  { %v471_v19 = vadd.f32 %v1939_v18, %v2378_v58  ;;  %v465_v20 = vpop.f32.mrb[5].mxu0 }
 0x2e8   :  { %v466_v21 = vadd.f32 %v2378_v58, %v465_v20 }
 0x2e9   :  { %489 = vst.msk [vmem:[#allocation2 + $0x28] sm:$0xff] %vm354_vm0, %v471_v19 }
 0x2ea   :  { %488 = vst.msk [vmem:[#allocation2 + $0x20] sm:$0xff] %vm354_vm0, %v466_v21  ;;  %v1942_v22 = vpop.f32.mrb[6].mxu0  ;;  %508 = vrot.lane.b32.xlu1 %v466_v21, %s2272_s11 }
 0x2eb   :  { %v481_v24 = vadd.f32 %v1942_v22, %v2378_v58  ;;  %v475_v25 = vpop.f32.mrb[7].mxu0 }
 0x2ec   :  { %v476_v26 = vadd.f32 %v2378_v58, %v475_v25  ;;  %v662_v58 = vld [vmem:[#allocation2 + $0x8] sm:$0xff] }
 0x2ed   :  { %491 = vst.msk [vmem:[#allocation2 + $0x38] sm:$0xff] %vm354_vm0, %v481_v24 }
 0x2ee   :  { %490 = vst.msk [vmem:[#allocation2 + $0x30] sm:$0xff] %vm354_vm0, %v476_v26  ;;  %540 = vrot.lane.b32.xlu1 %v466_v21, %s2273_s1 }
 0x2f2   :  { %510 = vrot.lane.b32.xlu1 %v471_v19, %s2272_s11 }
 0x2f4   :  { %v658_v28 = vpop.f32.mrb[8].mxu0 }
 0x2f5   :  { %672 = vrot.lane.b32.xlu0 %v658_v28, %s2272_s11  ;;  %v1953_v29 = vpop.f32.mrb[9].mxu0  ;;  %v687_v30 = vadd.f32 %v2470_v27, %v658_v28  ;;  %v663_v31 = vadd.f32 %v662_v58, %v658_v28 }
 0x2f6   :  { %542 = vrot.lane.b32.xlu1 %v471_v19, %s2273_s1 }
 0x2f7   :  { %v1827_v32 = vmul.f32 -1.442695, %v663_v31 }
 0x2f9   :  { %689 = vrot.lane.b32.xlu0 %v687_v30, %s2273_s1  ;;  %2125 = vpow2.f32 %v1827_v32  ;;  %v878_v30 = vld [vmem:[#allocation2 + $0x18] sm:$0xff] }
 0x2fa   :  { %512 = vrot.lane.b32.xlu1 %v476_v26, %s2272_s11 }
 0x2fe   :  { %544 = vrot.lane.b32.xlu1 %v476_v26, %s2273_s1 }
 0x302   :  { %514 = vrot.lane.b32.xlu1 %v481_v24, %s2272_s11 }
 0x303   :  { %v2126_v33 = vpop.eup %2125 }
 0x304   :  { %v667_v35 = vadd.f32 1.0, %v2126_v33 }
 0x306   :  { %546 = vrot.lane.b32.xlu1 %v481_v24, %s2273_s1  ;;  %2127 = vrcp.f32 %v667_v35 }
 0x310   :  { %v2128_v45 = vpop.eup %2127 }
 0x35c   :  { %v509_v34 = vpop.permute.xlu1 %508 }
 0x35d   :  { %528 = vst.msk [vmem:[#allocation3 + $0x20] sm:$0xff] %vm354_vm0, %v509_v34  ;;  %v886_v34 = vld [vmem:[#allocation3 + $0x18] sm:$0xff] }
 0x360   :  { %v541_v36 = vpop.permute.xlu1 %540 }
 0x361   :  { %560 = vst.msk [vmem:[#allocation4 + $0x20] sm:$0xff] %vm354_vm0, %v541_v36 }
 0x364   :  { %v511_v37 = vpop.permute.xlu1 %510 }
 0x365   :  { %529 = vst.msk [vmem:[#allocation3 + $0x28] sm:$0xff] %vm354_vm0, %v511_v37 }
 0x367   :  { %v673_v40 = vpop.permute.xlu0 %672 }
 0x368   :  { %v543_v38 = vpop.permute.xlu1 %542  ;;  %v675_v41 = vadd.f32 %v673_v40, %v670_v39 }
 0x369   :  { %561 = vst.msk [vmem:[#allocation4 + $0x28] sm:$0xff] %vm354_vm0, %v543_v38 }
 0x36a   :  { %v1828_v42 = vmul.f32 -1.442695, %v675_v41  ;;  %v898_v41 = vld [vmem:[#allocation4 + $0x18] sm:$0xff] }
 0x36b   :  { %v690_v44 = vpop.permute.xlu0 %689 }
 0x36c   :  { %v513_v43 = vpop.permute.xlu1 %512  ;;  %2129 = vpow2.f32 %v1828_v42  ;;  %v692_v46 = vmul.f32 %v2128_v45, %v690_v44 }
 0x36d   :  { %530 = vst.msk [vmem:[#allocation3 + $0x30] sm:$0xff] %vm354_vm0, %v513_v43 }
 0x36e   :  { %v693_v49 = vadd.f32 %v692_v46, %v682_v48 }
 0x370   :  { %v545_v47 = vpop.permute.xlu1 %544  ;;  %2131 = vtanh.f32 %v693_v49 }
 0x371   :  { %562 = vst.msk [vmem:[#allocation4 + $0x30] sm:$0xff] %vm354_vm0, %v545_v47 }
 0x374   :  { %v515_v50 = vpop.permute.xlu1 %514 }
 0x375   :  { %531 = vst.msk [vmem:[#allocation3 + $0x38] sm:$0xff] %vm354_vm0, %v515_v50 }
 0x376   :  { %v2130_v51 = vpop.eup %2129 }
 0x377   :  { %v679_v52 = vadd.f32 1.0, %v2130_v51 }
 0x378   :  { %v547_v53 = vpop.permute.xlu1 %546 }
 0x379   :  { %563 = vst.msk [vmem:[#allocation4 + $0x38] sm:$0xff] %vm354_vm0, %v547_v53  ;;  %2133 = vrcp.f32 %v679_v52  ;;  %v984_v53 = vld [vmem:[#allocation2 + $0x20] sm:$0xff] }
 0x37a   :  { %v2132_v54 = vpop.eup %2131 }
 0x37b   :  { %v695_v55 = vsub.f32 %v2447_v16, %v2132_v54 }
 0x383   :  { %v2134_v56 = vpop.eup %2133 }
 0x384   :  { %v696_v59 = vmul.f32 %v2134_v56, %v695_v55 }
 0x386   :  { %v697_v60 = vadd.f32 %v2132_v54, %v696_v59 }
 0x388   :  { %698 = vst.msk [vmem:[#allocation5 + $0x8] sm:$0xff] %vm354_vm0, %v697_v60  ;;  %1963 = vmatmul.mubr.msk.f32.vlgmr.msra.gmra.mrb[0].mxu1 %vm354_vm0, %v697_v60 }
 0x389   :  { %2068 = vmatpush3.bf16.msra.mxu1 %v2394_v6  ;;  %1984 = vmatprep.mubr.msk.f32.mxu1 %vm2277_vm1, %v2278_v10 }
 0x38a   :  { %2069 = vmatprep.subr.bf16.mxu1 %v2276_v3 }
 0x38d   :  { %2071 = vmatpush3.bf16.msra.mxu1 %v2402_v9 }
 0x38e   :  { %2078 = vmatprep.subr.bf16.mxu1 %v2276_v3 }
 0x45b   :  { %v768_v61 = vpop.f32.mrb[0].mxu1 }
 0x45c   :  { %782 = vrot.lane.b32.xlu0 %v768_v61, %s2272_s11  ;;  %v1964_v62 = vpop.f32.mrb[1].mxu1  ;;  %v793_v63 = vadd.f32 %v768_v61, %v2470_v27  ;;  %v773_v1 = vadd.f32 %v772_v0, %v768_v61 }
 0x45e   :  { %v1830_v2 = vmul.f32 -1.442695, %v773_v1 }
 0x460   :  { %795 = vrot.lane.b32.xlu0 %v793_v63, %s2273_s1  ;;  %2135 = vpow2.f32 %v1830_v2 }
 0x46a   :  { %v2136_v4 = vpop.eup %2135 }
 0x46b   :  { %v777_v5 = vadd.f32 1.0, %v2136_v4  ;;  %v1004_v4 = vld [vmem:[#allocation4 + $0x20] sm:$0xff] }
 0x46d   :  { %2137 = vrcp.f32 %v777_v5 }
 0x477   :  { %v2138_v13 = vpop.eup %2137 }
 0x4ce   :  { %v783_v57 = vpop.permute.xlu0 %782 }
 0x4cf   :  { %v785_v8 = vadd.f32 %v783_v57, %v780_v7 }
 0x4d1   :  { %v1831_v11 = vmul.f32 -1.442695, %v785_v8 }
 0x4d2   :  { %v796_v12 = vpop.permute.xlu0 %795 }
 0x4d3   :  { %2139 = vpow2.f32 %v1831_v11  ;;  %v798_v14 = vmul.f32 %v2138_v13, %v796_v12 }
 0x4d5   :  { %v799_v16 = vadd.f32 %v798_v14, %v792_v15 }
 0x4d7   :  { %2141 = vtanh.f32 %v799_v16 }
 0x4dd   :  { %v2140_v18 = vpop.eup %2139 }
 0x4de   :  { %v789_v19 = vadd.f32 1.0, %v2140_v18 }
 0x4e0   :  { %2143 = vrcp.f32 %v789_v19  ;;  %v49_v19 = vld [vmem:[#allocation9 + $0x40] sm:$0xff] }
 0x4e1   :  { %v2142_v20 = vpop.eup %2141 }
 0x4e2   :  { %v801_v21 = vsub.f32 %v697_v60, %v2142_v20  ;;  %v992_v60 = vld [vmem:[#allocation3 + $0x20] sm:$0xff] }
 0x4ea   :  { %v2144_v22 = vpop.eup %2143 }
 0x4eb   :  { %v802_v24 = vmul.f32 %v2144_v22, %v801_v21 }
 0x4ed   :  { %v803_v25 = vadd.f32 %v2142_v20, %v802_v24  ;;  %v50_v20 = vld [vmem:[#allocation9 + $0x48] sm:$0xff] }
 0x4ee   :  { %v2090_v21 = vpack.c.bf16 %v50_v20, %v49_v19 }
 0x4ef   :  { %804 = vst.msk [vmem:[#allocation5 + $0x10] sm:$0xff] %vm354_vm0, %v803_v25  ;;  %1974 = vmatmul.mubr.msk.f32.vlgmr.msra.gmra.mrb[10].mxu0 %vm354_vm0, %v803_v25 }
 0x4f0   :  { %2074 = vmatpush3.bf16.msra.mxu0 %v2394_v6  ;;  %1995 = vmatprep.mubr.msk.f32.mxu0 %vm2277_vm1, %v2278_v10 }
 0x4f1   :  { %2075 = vmatprep.subr.bf16.mxu0 %v2276_v3 }
 0x4f4   :  { %2077 = vmatpush3.bf16.msra.mxu0 %v2402_v9 }
 0x4f5   :  { %2084 = vmatprep.subr.bf16.mxu0 %v2276_v3 }
 0x5c2   :  { %v874_v26 = vpop.f32.mrb[10].mxu0 }
 0x5c3   :  { %888 = vrot.lane.b32.xlu0 %v874_v26, %s2272_s11  ;;  %v1975_v28 = vpop.f32.mrb[11].mxu0  ;;  %v899_v29 = vadd.f32 %v874_v26, %v2470_v27  ;;  %v879_v58 = vadd.f32 %v878_v30, %v874_v26 }
 0x5c5   :  { %v1833_v31 = vmul.f32 -1.442695, %v879_v58 }
 0x5c7   :  { %901 = vrot.lane.b32.xlu0 %v899_v29, %s2273_s1  ;;  %2145 = vpow2.f32 %v1833_v31  ;;  %v1110_v31 = vld [vmem:[#allocation4 + $0x28] sm:$0xff] }
 0x5d1   :  { %v2146_v32 = vpop.eup %2145 }
 0x5d2   :  { %v883_v33 = vadd.f32 1.0, %v2146_v32 }
 0x5d4   :  { %2147 = vrcp.f32 %v883_v33 }
 0x5de   :  { %v2148_v39 = vpop.eup %2147 }
 0x635   :  { %v889_v35 = vpop.permute.xlu0 %888 }
 0x636   :  { %v891_v36 = vadd.f32 %v889_v35, %v886_v34 }
 0x638   :  { %v1834_v37 = vmul.f32 -1.442695, %v891_v36 }
 0x639   :  { %v902_v38 = vpop.permute.xlu0 %901 }
 0x63a   :  { %2149 = vpow2.f32 %v1834_v37  ;;  %v904_v40 = vmul.f32 %v2148_v39, %v902_v38  ;;  %v51_v38 = vld [vmem:[#allocation9 + $0x50] sm:$0xff]  ;;  %v52_v39 = vld [vmem:[#allocation9 + $0x58] sm:$0xff] }
 0x63c   :  { %v905_v42 = vadd.f32 %v904_v40, %v898_v41 }
 0x63e   :  { %2151 = vtanh.f32 %v905_v42  ;;  %v2094_v42 = vpack.c.bf16 %v52_v39, %v51_v38  ;;  %v1196_v38 = vld [vmem:[#allocation2 + $0x30] sm:$0xff] }
 0x644   :  { %v2150_v43 = vpop.eup %2149 }
 0x645   :  { %v895_v44 = vadd.f32 1.0, %v2150_v43  ;;  %v1335_v43 = vld [vmem:[#allocation5] sm:$0xff] }
 0x647   :  { %2153 = vrcp.f32 %v895_v44  ;;  %v1336_v44 = vld [vmem:[#allocation5 + $0x8] sm:$0xff] }
 0x648   :  { %v2152_v45 = vpop.eup %2151 }
 0x649   :  { %v907_v46 = vsub.f32 %v803_v25, %v2152_v45 }
 0x651   :  { %v2154_v47 = vpop.eup %2153 }
 0x652   :  { %v908_v48 = vmul.f32 %v2154_v47, %v907_v46 }
 0x654   :  { %v909_v49 = vadd.f32 %v2152_v45, %v908_v48  ;;  %v1337_v45 = vld [vmem:[#allocation5 + $0x10] sm:$0xff] }
 0x656   :  { %910 = vst.msk [vmem:[#allocation5 + $0x18] sm:$0xff] %vm354_vm0, %v909_v49  ;;  %1985 = vmatmul.mubr.msk.f32.vlgmr.msra.gmra.mrb[2].mxu1 %vm354_vm0, %v909_v49 }
 0x657   :  { %2080 = vmatpush3.bf16.msra.mxu1 %v2394_v6  ;;  %2006 = vmatprep.mubr.msk.f32.mxu1 %vm2277_vm1, %v2278_v10 }
 0x658   :  { %2081 = vmatprep.subr.bf16.mxu1 %v2276_v3 }
 0x65b   :  { %2083 = vmatpush3.bf16.msra.mxu1 %v2402_v9 }
 0x65c   :  { %2091 = vmatprep.subr.bf16.mxu1 %v2090_v21 }
 0x65d   :  { %v1338_v46 = vld [vmem:[#allocation5 + $0x18] sm:$0xff] }
 0x729   :  { %v980_v50 = vpop.f32.mrb[2].mxu1 }
 0x72a   :  { %994 = vrot.lane.b32.xlu0 %v980_v50, %s2272_s11  ;;  %v1986_v51 = vpop.f32.mrb[3].mxu1  ;;  %v1005_v52 = vadd.f32 %v980_v50, %v2470_v27  ;;  %v985_v54 = vadd.f32 %v984_v53, %v980_v50 }
 0x72c   :  { %v1836_v55 = vmul.f32 -1.442695, %v985_v54  ;;  %v2549_v54 = vld [vmem:[%s2635_s2 + $0x2] ss:$0 sm:$0xff]  ;;  %s2279_s2 = smov 16  }
 0x72e   :  { %1007 = vrot.lane.b32.xlu0 %v1005_v52, %s2273_s1  ;;  %2155 = vpow2.f32 %v1836_v55 }
 0x738   :  { %v2156_v56 = vpop.eup %2155 }
 0x739   :  { %v989_v59 = vadd.f32 1.0, %v2156_v56 }
 0x73b   :  { %2157 = vrcp.f32 %v989_v59 }
 0x745   :  { %v2158_v1 = vpop.eup %2157 }
 0x79c   :  { %v995_v61 = vpop.permute.xlu0 %994 }
 0x79d   :  { %v997_v62 = vadd.f32 %v995_v61, %v992_v60 }
 0x79f   :  { %v1837_v63 = vmul.f32 -1.442695, %v997_v62 }
 0x7a0   :  { %v1008_v0 = vpop.permute.xlu0 %1007 }
 0x7a1   :  { %2159 = vpow2.f32 %v1837_v63  ;;  %v1010_v2 = vmul.f32 %v2158_v1, %v1008_v0 }
 0x7a3   :  { %v1011_v5 = vadd.f32 %v1010_v2, %v1004_v4 }
 0x7a5   :  { %2161 = vtanh.f32 %v1011_v5 }
 0x7ab   :  { %v2160_v7 = vpop.eup %2159 }
 0x7ac   :  { %v1001_v57 = vadd.f32 1.0, %v2160_v7 }
 0x7ae   :  { %2163 = vrcp.f32 %v1001_v57 }
 0x7af   :  { %v2162_v8 = vpop.eup %2161 }
 0x7b0   :  { %v1013_v11 = vsub.f32 %v909_v49, %v2162_v8 }
 0x7b8   :  { %v2164_v12 = vpop.eup %2163 }
 0x7b9   :  { %v1014_v13 = vmul.f32 %v2164_v12, %v1013_v11 }
 0x7bb   :  { %v1015_v14 = vadd.f32 %v2162_v8, %v1014_v13 }
 0x7bd   :  { %1016 = vst.msk [vmem:[#allocation5 + $0x20] sm:$0xff] %vm354_vm0, %v1015_v14  ;;  %1996 = vmatmul.mubr.msk.f32.vlgmr.msra.gmra.mrb[12].mxu0 %vm354_vm0, %v1015_v14 }
 0x7be   :  { %2086 = vmatpush3.bf16.msra.mxu0 %v2394_v6  ;;  %2017 = vmatprep.mubr.msk.f32.mxu0 %vm2277_vm1, %v2278_v10  ;;  %v1090_v6 = vld [vmem:[#allocation2 + $0x28] sm:$0xff] }
 0x7bf   :  { %2087 = vmatprep.subr.bf16.mxu0 %v2276_v3 }
 0x7c2   :  { %2089 = vmatpush3.bf16.msra.mxu0 %v2402_v9  ;;  %v1098_v9 = vld [vmem:[#allocation3 + $0x28] sm:$0xff] }
 0x7c4   :  { %v1339_v47 = vld [vmem:[#allocation5 + $0x20] sm:$0xff] }
 0x890   :  { %v1086_v15 = vpop.f32.mrb[12].mxu0 }
 0x891   :  { %1100 = vrot.lane.b32.xlu0 %v1086_v15, %s2272_s11  ;;  %v1997_v16 = vpop.f32.mrb[13].mxu0  ;;  %v1111_v18 = vadd.f32 %v1086_v15, %v2470_v27  ;;  %v1091_v22 = vadd.f32 %v1090_v6, %v1086_v15 }
 0x893   :  { %v1839_v24 = vmul.f32 -1.442695, %v1091_v22 }
 0x895   :  { %1113 = vrot.lane.b32.xlu0 %v1111_v18, %s2273_s1  ;;  %2165 = vpow2.f32 %v1839_v24 }
 0x89f   :  { %v2166_v10 = vpop.eup %2165 }
 0x8a0   :  { %v1095_v3 = vadd.f32 1.0, %v2166_v10 }
 0x8a2   :  { %2167 = vrcp.f32 %v1095_v3 }
 0x8ac   :  { %v2168_v30 = vpop.eup %2167 }
 0x903   :  { %v1101_v25 = vpop.permute.xlu0 %1100 }
 0x904   :  { %v1103_v26 = vadd.f32 %v1101_v25, %v1098_v9 }
 0x906   :  { %v1840_v28 = vmul.f32 -1.442695, %v1103_v26 }
 0x907   :  { %v1114_v29 = vpop.permute.xlu0 %1113 }
 0x908   :  { %2169 = vpow2.f32 %v1840_v28  ;;  %v1116_v58 = vmul.f32 %v2168_v30, %v1114_v29 }
 0x90a   :  { %v1117_v32 = vadd.f32 %v1116_v58, %v1110_v31 }
 0x90c   :  { %2171 = vtanh.f32 %v1117_v32 }
 0x912   :  { %v2170_v33 = vpop.eup %2169 }
 0x913   :  { %v1107_v34 = vadd.f32 1.0, %v2170_v33 }
 0x915   :  { %2173 = vrcp.f32 %v1107_v34 }
 0x916   :  { %v2172_v35 = vpop.eup %2171 }
 0x917   :  { %v1119_v36 = vsub.f32 %v1015_v14, %v2172_v35 }
 0x91f   :  { %v2174_v37 = vpop.eup %2173 }
 0x920   :  { %v1120_v40 = vmul.f32 %v2174_v37, %v1119_v36 }
 0x922   :  { %v2531_v41 = vadd.f32 %v2172_v35, %v1120_v40 }
 0x924   :  { %1122 = vst.msk [vmem:[#allocation5 + $0x28] sm:$0xff] %vm354_vm0, %v2531_v41  ;;  %2007 = vmatmul.mubr.msk.f32.vlgmr.msra.gmra.mrb[4].mxu1 %vm354_vm0, %v2531_v41 }
 0x925   :  { %2093 = vmatpush3.bf16.msra.mxu1 %v2090_v21  ;;  %2028 = vmatprep.mubr.msk.f32.mxu1 %vm354_vm0, %v1335_v43 }
 0x926   :  { %2095 = vmatprep.subr.bf16.mxu1 %v2094_v42 }
 0x929   :  { %2097 = vmatpush3.bf16.msra.mxu1 %v2094_v42 }
 0x92b   :  { %v1340_v48 = vld [vmem:[#allocation5 + $0x28] sm:$0xff] }
 0x92c   :  { %2029 = vmatmul.mubr.msk.f32.vlgmr.msra.gmra.mrb[6].mxu1 %vm354_vm0, %v1336_v44  ;;  %v1204_v44 = vld [vmem:[#allocation3 + $0x30] sm:$0xff] }
 0x92d   :  { %2031 = vmatprep.mubr.msk.f32.mxu1 %vm354_vm0, %v1337_v45 }
 0x930   :  { %2032 = vmatmul.mubr.msk.f32.gmra.mrb[8].mxu1 %vm354_vm0, %v1338_v46 }
 0x931   :  { %2034 = vmatprep.mubr.msk.f32.mxu1 %vm354_vm0, %v1339_v47 }
 0x934   :  { %2035 = vmatmul.mubr.msk.f32.gmra.mrb[10].mxu1 %vm354_vm0, %v1340_v48 }
 0x9f7   :  { %v1192_v49 = vpop.f32.mrb[4].mxu1 }
 0x9f8   :  { %1206 = vrot.lane.b32.xlu0 %v1192_v49, %s2272_s11  ;;  %v2008_v50 = vpop.f32.mrb[5].mxu1  ;;  %v1217_v51 = vadd.f32 %v1192_v49, %v2470_v27  ;;  %v1197_v39 = vadd.f32 %v1196_v38, %v1192_v49 }
 0x9fa   :  { %v1842_v40 = vmul.f32 -1.442695, %v1197_v39 }
 0x9fc   :  { %1219 = vrot.lane.b32.xlu0 %v1217_v51, %s2273_s1  ;;  %2175 = vpow2.f32 %v1842_v40 }
 0x9ff   :  { %v2030_v52 = vpop.f32.mrb[6].mxu1 }
 0xa00   :  { %v1437_v53 = vpop.f32.mrb[7].mxu1  ;;  %v1443_v56 = vadd.f32 %v2030_v52, %v2549_v54  ;;  %v1216_v52 = vld [vmem:[#allocation4 + $0x30] sm:$0xff] }
 0xa01   :  { %v1438_v61 = vadd.f32 %v2549_v54, %v1437_v53 }
 0xa03   :  { %v2033_v55 = vpop.f32.mrb[8].mxu1 }
 0xa04   :  { %v1453_v59 = vadd.f32 %v2033_v55, %v2549_v54  ;;  %v1447_v60 = vpop.f32.mrb[9].mxu1 }
 0xa05   :  { %v1448_v62 = vadd.f32 %v2549_v54, %v1447_v60 }
 0xa06   :  { %v1492_v63 = vcombine.low %v1443_v56, %v1453_v59  ;;  %v1493_v0 = vcombine.high %v1443_v56, %v1453_v59  ;;  %v2176_v42 = vpop.eup %2175 }
 0xa07   :  { %v1476_v1 = vcombine.low %v1438_v61, %v1448_v62  ;;  %v1477_v2 = vcombine.high %v1438_v61, %v1448_v62  ;;  %v2555_v4 = vpop.f32.mrb[10].mxu1  ;;  %v1201_v43 = vadd.f32 1.0, %v2176_v42 }
 0xa08   :  { %v1500_v5 = vrot.slane %v1492_v63, %v2338_v17  ;;  %v1507_v7 = vrot.slane %v1493_v0, %v2338_v17  ;;  %v2559_v57 = vpop.f32.mrb[11].mxu1 }
 0xa09   :  { %v1484_v8 = vrot.slane %v1476_v1, %v2338_v17  ;;  %v1491_v11 = vrot.slane %v1477_v2, %v2338_v17  ;;  %2177 = vrcp.f32 %v1201_v43 }
 0xa0b   :  { %v1540_v12 = vcombine.low %v1484_v8, %v1500_v5  ;;  %v1541_v13 = vcombine.high %v1484_v8, %v1500_v5  ;;  %v1556_v14 = vcombine.low %v1491_v11, %v1507_v7  ;;  %v1557_v15 = vcombine.high %v1491_v11, %v1507_v7 }
 0xa0d   :  { %v1548_v16 = vrot.slane %v1540_v12, %v2340_v23  ;;  %v1555_v18 = vrot.slane %v1541_v13, %v2340_v23  ;;  %v1564_v19 = vrot.slane %v1556_v14, %v2340_v23  ;;  %v1571_v20 = vrot.slane %v1557_v15, %v2340_v23  ;;  %v1310_v12 = vld [vmem:[#allocation3 + $0x38] sm:$0xff] }
 0xa0f   :  { %v1856_v21 = vcombine.low %v1548_v16, %v1555_v18  ;;  %v1858_v6 = vcombine.high %v1548_v16, %v1555_v18  ;;  %v1860_v22 = vcombine.low %v1564_v19, %v1571_v20  ;;  %v1862_v24 = vcombine.high %v1564_v19, %v1571_v20 }
 0xa11   :  { %v1620_v10 = vrot.slane %v1856_v21, %v2338_v17  ;;  %v1636_v3 = vrot.slane %v1858_v6, %v2338_v17  ;;  %v1652_v9 = vrot.slane %v1860_v22, %v2338_v17  ;;  %v1668_v25 = vrot.slane %v1862_v24, %v2338_v17 }
 0xa13   :  { %v1676_v26 = vcombine.low %v1620_v10, %v1636_v3  ;;  %v1708_v28 = vcombine.low %v1652_v9, %v1668_v25  ;;  %v1677_v29 = vcombine.high %v1620_v10, %v1636_v3  ;;  %v1709_v30 = vcombine.high %v1652_v9, %v1668_v25  ;;  %v2178_v50 = vpop.eup %2177 }
 0xa15   :  { %v2572_v58 = vrot.slane %v1676_v26, %v2340_v23  ;;  %v2575_v31 = vrot.slane %v1708_v28, %v2340_v23  ;;  %v1691_v32 = vrot.slane %v1677_v29, %v2340_v23  ;;  %v1723_v33 = vrot.slane %v1709_v30, %v2340_v23 }
 0xa16   :  { %v1463_v28 = vadd.f32 %v2555_v4, %v2549_v54 }
 0xa17   :  { %v1741_v34 = vcombine.high %v2572_v58, %v2575_v31  ;;  %v1743_v35 = vcombine.high %v1691_v32, %v1723_v33  ;;  %v1740_v36 = vcombine.low %v2572_v58, %v2575_v31  ;;  %v1742_v37 = vcombine.low %v1691_v32, %v1723_v33 }
 0xa18   :  { %v1458_v32 = vadd.f32 %v2549_v54, %v2559_v57 }
 0xa19   :  { %1749 = vrot.lane.b32.xlu1 %v1741_v34, %s2279_s2 }
 0xa1d   :  { %1757 = vrot.lane.b32.xlu1 %v1743_v35, %s2280_s18 }
 0xa6a   :  { %v1207_v45 = vpop.permute.xlu0 %1206 }
 0xa6b   :  { %v1209_v46 = vadd.f32 %v1207_v45, %v1204_v44 }
 0xa6d   :  { %v1843_v47 = vmul.f32 -1.442695, %v1209_v46 }
 0xa6e   :  { %v1220_v48 = vpop.permute.xlu0 %1219 }
 0xa6f   :  { %2179 = vpow2.f32 %v1843_v47  ;;  %v1222_v51 = vmul.f32 %v2178_v50, %v1220_v48 }
 0xa71   :  { %v1223_v53 = vadd.f32 %v1222_v51, %v1216_v52 }
 0xa73   :  { %2181 = vtanh.f32 %v1223_v53 }
 0xa79   :  { %v2180_v55 = vpop.eup %2179 }
 0xa7a   :  { %v1213_v56 = vadd.f32 1.0, %v2180_v55 }
 0xa7c   :  { %2183 = vrcp.f32 %v1213_v56 }
 0xa7d   :  { %v2182_v49 = vpop.eup %2181 }
 0xa7e   :  { %v1225_v59 = vsub.f32 %v2531_v41, %v2182_v49  ;;  %v1302_v41 = vld [vmem:[#allocation2 + $0x38] sm:$0xff] }
 0xa86   :  { %v2184_v60 = vpop.eup %2183 }
 0xa87   :  { %v1226_v61 = vmul.f32 %v2184_v60, %v1225_v59 }
 0xa89   :  { %v1227_v62 = vadd.f32 %v2182_v49, %v1226_v61 }
 0xa8b   :  { %1228 = vst.msk [vmem:[#allocation5 + $0x30] sm:$0xff] %vm354_vm0, %v1227_v62  ;;  %2018 = vmatmul.mubr.msk.f32.vlgmr.msra.gmra.mrb[14].mxu0 %vm354_vm0, %v1227_v62 }
 0xa92   :  { %v1341_v63 = vld [vmem:[#allocation5 + $0x30] sm:$0xff] }
 0xa93   :  { %2037 = vmatprep.mubr.msk.f32.mxu1 %vm354_vm0, %v1341_v63 }
 0xb5e   :  { %v1298_v0 = vpop.f32.mrb[14].mxu0 }
 0xb5f   :  { %1312 = vrot.lane.b32.xlu0 %v1298_v0, %s2272_s11  ;;  %v2019_v1 = vpop.f32.mrb[15].mxu0  ;;  %v1323_v2 = vadd.f32 %v1298_v0, %v2470_v27  ;;  %v1303_v5 = vadd.f32 %v1302_v41, %v1298_v0  ;;  %v1322_v27 = vld [vmem:[#allocation4 + $0x38] sm:$0xff] }
 0xb61   :  { %v1845_v7 = vmul.f32 -1.442695, %v1303_v5 }
 0xb63   :  { %1325 = vrot.lane.b32.xlu0 %v1323_v2, %s2273_s1  ;;  %2185 = vpow2.f32 %v1845_v7 }
 0xb67   :  { %1753 = vrot.lane.b32.xlu0 %v1742_v37, %s2271_s10 }
 0xb6d   :  { %v2186_v8 = vpop.eup %2185 }
 0xb6e   :  { %v1307_v11 = vadd.f32 1.0, %v2186_v8 }
 0xb70   :  { %2187 = vrcp.f32 %v1307_v11 }
 0xb7a   :  { %v2188_v18 = vpop.eup %2187 }
 0xbd1   :  { %v1313_v13 = vpop.permute.xlu0 %1312 }
 0xbd2   :  { %v1315_v14 = vadd.f32 %v1313_v13, %v1310_v12 }
 0xbd4   :  { %v1846_v15 = vmul.f32 -1.442695, %v1315_v14 }
 0xbd5   :  { %v1326_v16 = vpop.permute.xlu0 %1325 }
 0xbd6   :  { %2189 = vpow2.f32 %v1846_v15  ;;  %v1328_v19 = vmul.f32 %v2188_v18, %v1326_v16 }
 0xbd8   :  { %v1329_v20 = vadd.f32 %v1328_v19, %v1322_v27 }
 0xbd9   :  { %v1754_v12 = vpop.permute.xlu0 %1753 }
 0xbda   :  { %2191 = vtanh.f32 %v1329_v20 }
 0xbe0   :  { %v2190_v21 = vpop.eup %2189 }
 0xbe1   :  { %v1319_v6 = vadd.f32 1.0, %v2190_v21 }
 0xbe3   :  { %2193 = vrcp.f32 %v1319_v6 }
 0xbe4   :  { %v2192_v22 = vpop.eup %2191 }
 0xbe5   :  { %v1331_v24 = vsub.f32 %v1227_v62, %v2192_v22 }
 0xbed   :  { %v2194_v10 = vpop.eup %2193 }
 0xbee   :  { %v1332_v3 = vmul.f32 %v2194_v10, %v1331_v24 }
 0xbf0   :  { %v1333_v9 = vadd.f32 %v2192_v22, %v1332_v3 }
 0xbf2   :  { %1334 = vst.msk [vmem:[#allocation5 + $0x38] sm:$0xff] %vm354_vm0, %v1333_v9 }
 0xbf9   :  { %v1342_v25 = vld [vmem:[#allocation5 + $0x38] sm:$0xff] }
 0xbfa   :  { %2038 = vmatmul.mubr.msk.f32.gmra.mrb[12].mxu1 %vm354_vm0, %v1342_v25 }
 0xccd   :  { %v2039_v26 = vpop.f32.mrb[12].mxu1 }
 0xcce   :  { %v1473_v29 = vadd.f32 %v2039_v26, %v2549_v54  ;;  %v1467_v30 = vpop.f32.mrb[13].mxu1 }
 0xccf   :  { %v1468_v33 = vadd.f32 %v2549_v54, %v1467_v30 }
 0xcd0   :  { %v1524_v34 = vcombine.low %v1463_v28, %v1473_v29  ;;  %v1525_v35 = vcombine.high %v1463_v28, %v1473_v29 }
 0xcd1   :  { %v1508_v37 = vcombine.low %v1458_v32, %v1468_v33  ;;  %v1509_v38 = vcombine.high %v1458_v32, %v1468_v33 }
 0xcd2   :  { %v1532_v39 = vrot.slane %v1524_v34, %v2338_v17  ;;  %v1539_v40 = vrot.slane %v1525_v35, %v2338_v17 }
 0xcd3   :  { %v1516_v42 = vrot.slane %v1508_v37, %v2338_v17  ;;  %v1523_v4 = vrot.slane %v1509_v38, %v2338_v17 }
 0xcd5   :  { %v1572_v43 = vcombine.low %v1516_v42, %v1532_v39  ;;  %v1573_v44 = vcombine.high %v1516_v42, %v1532_v39  ;;  %v1588_v45 = vcombine.low %v1523_v4, %v1539_v40  ;;  %v1589_v46 = vcombine.high %v1523_v4, %v1539_v40 }
 0xcd7   :  { %v1580_v57 = vrot.slane %v1572_v43, %v2340_v23  ;;  %v1587_v54 = vrot.slane %v1573_v44, %v2340_v23  ;;  %v1596_v47 = vrot.slane %v1588_v45, %v2340_v23  ;;  %v1603_v48 = vrot.slane %v1589_v46, %v2340_v23 }
 0xcd9   :  { %v1857_v50 = vcombine.low %v1580_v57, %v1587_v54  ;;  %v1859_v51 = vcombine.high %v1580_v57, %v1587_v54  ;;  %v1861_v52 = vcombine.low %v1596_v47, %v1603_v48  ;;  %v1863_v53 = vcombine.high %v1596_v47, %v1603_v48 }
 0xcdb   :  { %v1627_v55 = vrot.slane %v1857_v50, %v2338_v17  ;;  %v1643_v56 = vrot.slane %v1859_v51, %v2338_v17  ;;  %v1659_v49 = vrot.slane %v1861_v52, %v2338_v17  ;;  %v1675_v59 = vrot.slane %v1863_v53, %v2338_v17  ;;  %v1750_v17 = vpop.permute.xlu1 %1749 }
 0xcdc   :  { %v1777_v13 = vsel %vm1776_vm2, %v1740_v36, %v1750_v17 }
 0xcdd   :  { %v1692_v60 = vcombine.low %v1627_v55, %v1643_v56  ;;  %v1724_v61 = vcombine.low %v1659_v49, %v1675_v59  ;;  %v1693_v62 = vcombine.high %v1627_v55, %v1643_v56  ;;  %v1725_v63 = vcombine.high %v1659_v49, %v1675_v59 }
 0xcde   :  { %v1778_v14 = vsel %vm354_vm0, %v1777_v13, %v1754_v12 }
 0xcdf   :  { %v1700_v0 = vrot.slane %v1692_v60, %v2340_v23  ;;  %v1732_v1 = vrot.slane %v1724_v61, %v2340_v23  ;;  %v1707_v2 = vrot.slane %v1693_v62, %v2340_v23  ;;  %v1739_v41 = vrot.slane %v1725_v63, %v2340_v23  ;;  %v1758_v23 = vpop.permute.xlu1 %1757 }
 0xce0   :  { %v1780_v16 = vsel %vm1779_vm3, %v1778_v14, %v1758_v23 }
 0xce1   :  { %v1744_v5 = vcombine.low %v1700_v0, %v1732_v1  ;;  %v1745_v7 = vcombine.high %v1700_v0, %v1732_v1  ;;  %v1746_v8 = vcombine.low %v1707_v2, %v1739_v41  ;;  %v1747_v11 = vcombine.high %v1707_v2, %v1739_v41 }
 0xce3   :  { %1761 = vrot.lane.b32.xlu0 %v1744_v5, %s2273_s1  ;;  %1765 = vrot.lane.b32.xlu1 %v1745_v7, %s2281_s19 }
 0xce7   :  { %1769 = vrot.lane.b32.xlu0 %v1746_v8, %s2272_s11  ;;  %1773 = vrot.lane.b32.xlu1 %v1747_v11, %s2282_s20 }
 0xd55   :  { %v1762_v15 = vpop.permute.xlu0 %1761  ;;  %v1766_v18 = vpop.permute.xlu1 %1765 }
 0xd56   :  { %v1782_v19 = vsel %vm1781_vm4, %v1780_v16, %v1762_v15 }
 0xd57   :  { %v1784_v27 = vsel %vm1783_vm5, %v1782_v19, %v1766_v18 }
 0xd59   :  { %v1770_v20 = vpop.permute.xlu0 %1769  ;;  %v1774_v21 = vpop.permute.xlu1 %1773 }
 0xd5a   :  { %v1786_v6 = vsel %vm1785_vm6, %v1784_v27, %v1770_v20 }
 0xd5b   :  { %v1788_v58 = vsel %vm1787_vm7, %v1786_v6, %v1774_v21 }
 0xd5c   :  { %1789 = vst [vmem:[#allocation11] sm:$0xff] %v1788_v58 }
 0xd5d   :  { %2250 = shalt.err (!%p2247_p6)
}
 0xd5e   :  { %s2251_s26 = scalar_lea.hbm %s2636_s3, 128 }
 0xd5f   :  { %p2252_p7 = scmp.ne.s32.totalorder %s2636_s3, %s2251_s26  ;;  %p2255_p8 = scmp.lt.u32.totalorder %s2251_s26, %s2636_s3 }
 0xd61   :  { %p2257_p9 = pnand %p2255_p8, %p2252_p7 }
 0xd63   :  { %2260 = shalt.err (!%p2257_p9)
}
 0xd64   :  { %1799 = dma.vmem_to_hbm [thread:$0]  %s1797_s22, 128, %s2636_s3, [#allocation8]  }
 0xd65   :  { %2265 = dma.done.wait [#allocation8], 128  }
 0xd66   :  { %2266 = vsyncadd [#allocation8], 4294967168 }
 0xd67   :  { %1803 = vsyncpa [#allocation7], 1 }
 0xd68   :  { %1804 = vsyncpa [#allocation10], 1 }
 0xd69   :  { %1805 = vsyncpa [#allocation8], 1 }

</bundles_post_ra>
